<compile_context>
chip_gen: v7x
topology: tpu7x:2x2x1
jax: 0.10.0
libtpu: 0.0.40
codegen_flags: <defaults>
</compile_context>

<pallas_src>
import jax
import jax.numpy as jnp
from jax import lax
from jax.experimental import pallas as pl
from jax.experimental.pallas import tpu as pltpu

_BN_EPS = 1e-5


def convert2DFT(x, amp_min, amp_max, dst_flatten_order, img_shape):
    """Mirrors fit.utils.convert2DFT: tokens carry (normalized log-amplitude, normalized phase)."""
    amp = (x[..., 0] + 1.0) / 2.0 * (amp_max - amp_min) + amp_min
    amp = jnp.exp(amp)
    phi = x[..., 1] * jnp.pi
    dft = amp * jnp.cos(phi) + 1j * (amp * jnp.sin(phi))
    dft = dft[:, dst_flatten_order]          # un-shuffle to row-major half-plane
    return dft.reshape(-1, img_shape, img_shape // 2 + 1)


# ----------------------------- Pallas kernels ---------------------------------
def _stats_kernel(xpad_ref, par_ref, stats_ref):
    """Pass 1: conv(3x3) + ReLU, accumulate per-channel sum / sumsq over the batch.

    xpad_ref : (1, H+2, W+2) padded image block (one batch element), VMEM.
    par_ref  : (C, 10) SMEM  -- cols 0..8 = 3x3 taps (row-major), col 9 = conv bias.
    stats_ref: (2C, W) grid-resident accumulator -- rows [0, C) per-channel column sums,
               rows [C, 2C) per-channel column sums of squares.
    """
    @pl.when(pl.program_id(0) == 0)
    def _init():
        stats_ref[...] = jnp.zeros_like(stats_ref)

    Hp, Wp = xpad_ref.shape[1], xpad_ref.shape[2]
    H, W = Hp - 2, Wp - 2
    C = par_ref.shape[0]

    xp = xpad_ref[0]                                     # (H+2, W+2)

    # 3x3 conv as 9 shifted FMAs per channel on the VPU (taps outer so each shifted
    # slice is formed once and reused by all channels).
    acc = [jnp.zeros((H, W), jnp.float32) for _ in range(C)]
    for dy in range(3):
        for dx in range(3):
            tap = xp[dy:dy + H, dx:dx + W]
            for c in range(C):
                acc[c] = acc[c] + par_ref[c, 3 * dy + dx] * tap

    for c in range(C):
        y = jnp.maximum(acc[c] + par_ref[c, 9], 0.0)     # conv bias + ReLU
        stats_ref[c:c + 1, :] = stats_ref[c:c + 1, :] + jnp.sum(y, axis=0, keepdims=True)
        stats_ref[C + c:C + c + 1, :] = (
            stats_ref[C + c:C + c + 1, :] + jnp.sum(y * y, axis=0, keepdims=True))


def _apply_kernel(xpad_ref, par_ref, out_ref):
    """Pass 2: recompute conv(3x3)+ReLU, apply fused BN+1x1-conv scale/offset, add residual.

    xpad_ref: (1, H+2, W+2) padded image block, VMEM.
    par_ref : (C, 12) SMEM -- cols 0..8 taps, 9 = conv bias, 10 = fused per-channel
              scale (w2*gamma*rsqrt(var+eps)), 11 = fused scalar offset (replicated).
    out_ref : (1, H, W) lane-dense output block.
    """
    Hp, Wp = xpad_ref.shape[1], xpad_ref.shape[2]
    H, W = Hp - 2, Wp - 2
    C = par_ref.shape[0]

    xp = xpad_ref[0]                                     # (H+2, W+2)

    acc = [jnp.zeros((H, W), jnp.float32) for _ in range(C)]
    for dy in range(3):
        for dx in range(3):
            tap = xp[dy:dy + H, dx:dx + W]
            for c in range(C):
                acc[c] = acc[c] + par_ref[c, 3 * dy + dx] * tap

    # residual (centre of the padded tile) + fused offset (BN beta/mu + 1x1 bias).
    o = xp[1:1 + H, 1:1 + W] + par_ref[0, 11]
    for c in range(C):
        y = jnp.maximum(acc[c] + par_ref[c, 9], 0.0)
        o = o + par_ref[c, 10] * y
    out_ref[0] = o


def conv_block_pallas(img_hat, params):
    """conv_block(img_hat.unsqueeze(1)) + img_hat, channel dim squeezed."""
    w1, b1, gamma, beta, w2, b2 = params
    B, H, W = img_hat.shape
    C = w1.shape[0]
    Hp, Wp = H + 2, W + 2

    xpad = jnp.pad(img_hat.astype(jnp.float32), ((0, 0), (1, 1), (1, 1)))

    w1f = w1.reshape(C, 9).astype(jnp.float32)
    b1f = b1.reshape(C, 1).astype(jnp.float32)
    par1 = jnp.concatenate([w1f, b1f], axis=1)           # (C, 10)

    # ---- pass 1: global BN statistics (accumulated across the batch grid axis) ----
    stats = pl.pallas_call(
        _stats_kernel,
        out_shape=jax.ShapeDtypeStruct((2 * C, W), jnp.float32),
        grid=(B,),
        in_specs=[
            pl.BlockSpec((1, Hp, Wp), lambda b: (b, 0, 0)),
            pl.BlockSpec(memory_space=pltpu.MemorySpace.SMEM),
        ],
        out_specs=pl.BlockSpec((2 * C, W), lambda b: (0, 0)),
        compiler_params=pltpu.CompilerParams(dimension_semantics=("arbitrary",)),
    )(xpad, par1)

    # ---- fold BN affine + 1x1 conv + bias into per-channel scale and scalar offset ----
    n = jnp.float32(B * H * W)
    s = jnp.sum(stats[:C], axis=1)
    ss = jnp.sum(stats[C:], axis=1)
    mu = s / n
    # biased variance (PyTorch BN training-mode normalization); clamp guards the mild
    # E[y^2]-E[y]^2 cancellation (y >= 0 after ReLU so it stays well-conditioned here).
    var = jnp.maximum(ss / n - mu * mu, 0.0)
    inv = lax.rsqrt(var + _BN_EPS)
    w2f = w2.reshape(C).astype(jnp.float32)
    g = gamma.astype(jnp.float32)
    bt = beta.astype(jnp.float32)
    scale = w2f * g * inv                                            # (C,)
    offset = jnp.sum(w2f * (bt - g * mu * inv)) + b2.reshape(()).astype(jnp.float32)

    par2 = jnp.concatenate(
        [w1f, b1f, scale.reshape(C, 1), jnp.full((C, 1), offset, jnp.float32)],
        axis=1)                                                      # (C, 12)

    # ---- pass 2: normalize + 1x1 conv + residual, fully parallel over images ----
    out = pl.pallas_call(
        _apply_kernel,
        out_shape=jax.ShapeDtypeStruct((B, H, W), jnp.float32),
        grid=(B,),
        in_specs=[
            pl.BlockSpec((1, Hp, Wp), lambda b: (b, 0, 0)),
            pl.BlockSpec(memory_space=pltpu.MemorySpace.SMEM),
        ],
        out_specs=pl.BlockSpec((1, H, W), lambda b: (b, 0, 0)),
        compiler_params=pltpu.CompilerParams(dimension_semantics=("parallel",)),
    )(xpad, par2)
    return out


# ------------------------------ full forward ---------------------------------
def trec_only_conv_block_forward(x, fbp, mag_min, mag_max, dst_flatten_coords,
                                 img_shape, attenuation, params):
    del x  # unused by the PyTorch forward as well
    dft_hat = convert2DFT(fbp, mag_min, mag_max, dst_flatten_coords, img_shape)
    dft_hat = dft_hat * attenuation
    # TODO(synk): irfftn / roll have no Pallas primitive; computed in plain JAX glue.
    img_hat = jnp.roll(
        jnp.fft.irfftn(dft_hat, s=(img_shape, img_shape), axes=(1, 2)),
        (img_shape // 2, img_shape // 2), axis=(1, 2))
    img_post = conv_block_pallas(img_hat, params)   # conv block + residual, channel squeezed
    return fbp, img_post


# ------------------------------ reference ------------------------------------
def _reference_conv_block(img_hat, params):
    w1, b1, gamma, beta, w2, b2 = params
    x = img_hat[:, None]                              # (B, 1, H, W) NCHW
    dn = ('NCHW', 'OIHW', 'NCHW')
    y = lax.conv_general_dilated(x, w1, (1, 1), 'SAME', dimension_numbers=dn)
    y = y + b1.reshape(1, -1, 1, 1)
    y = jnp.maximum(y, 0.0)
    mu = y.mean(axis=(0, 2, 3), keepdims=True)
    var = ((y - mu) ** 2).mean(axis=(0, 2, 3), keepdims=True)
    y = (y - mu) / jnp.sqrt(var + _BN_EPS)
    y = y * gamma.reshape(1, -1, 1, 1) + beta.reshape(1, -1, 1, 1)
    o = lax.conv_general_dilated(y, w2, (1, 1), 'VALID', dimension_numbers=dn)
    o = o + b2.reshape(1, -1, 1, 1) + x
    return o[:, 0]


def init_params(key, d_conv=8):
    k1, k2, k3, k4 = jax.random.split(key, 4)
    bound1 = 1.0 / (1 * 3 * 3) ** 0.5
    w1 = jax.random.uniform(k1, (d_conv, 1, 3, 3), jnp.float32, -bound1, bound1)
    b1 = jax.random.uniform(k2, (d_conv,), jnp.float32, -bound1, bound1)
    gamma = jnp.ones((d_conv,), jnp.float32)   # BatchNorm2d default init
    beta = jnp.zeros((d_conv,), jnp.float32)
    bound2 = 1.0 / d_conv ** 0.5
    w2 = jax.random.uniform(k3, (1, d_conv, 1, 1), jnp.float32, -bound2, bound2)
    b2 = jax.random.uniform(k4, (1,), jnp.float32, -bound2, bound2)
    return w1, b1, gamma, beta, w2, b2


if __name__ == "__main__":
    B, img_shape, d_conv = 2, 16, 8
    T = img_shape * (img_shape // 2 + 1)     # number of Fourier tokens

    key = jax.random.PRNGKey(0)
    ks = jax.random.split(key, 6)
    fbp = jax.random.uniform(ks[0], (B, T, 2), jnp.float32, -1.0, 1.0)
    x_dummy = jax.random.normal(ks[1], (B, T, 2), jnp.float32)          # unused by forward
    dst_flatten_coords = jax.random.permutation(ks[2], T)
    attenuation = jax.random.uniform(ks[3], (1, img_shape, img_shape // 2 + 1),
                                     jnp.float32, 0.5, 1.0)
    mag_min, mag_max = jnp.float32(-1.0), jnp.float32(2.0)
    params = init_params(ks[4], d_conv)

    fbp_out, img_post = trec_only_conv_block_forward(
        x_dummy, fbp, mag_min, mag_max, dst_flatten_coords, img_shape,
        attenuation, params)
    img_post = jax.block_until_ready(img_post)

    # Correctness check against a pure-JAX (lax.conv) reference of the conv block.
    dft_hat = convert2DFT(fbp, mag_min, mag_max, dst_flatten_coords, img_shape) * attenuation
    img_hat = jnp.roll(jnp.fft.irfftn(dft_hat, s=(img_shape, img_shape), axes=(1, 2)),
                       (img_shape // 2, img_shape // 2), axis=(1, 2))
    ref = _reference_conv_block(img_hat, params)
    err = float(jnp.max(jnp.abs(img_post - ref)))
    assert img_post.shape == (B, img_shape, img_shape), img_post.shape
    assert err < 5e-2, f"mismatch vs reference: max abs err = {err}"

    print("KERNEL_OK")
</pallas_src>

<mosaic_0001>
module attributes {stable_mosaic.version = 11 : i64} {
  func.func @_stats_kernel(%arg0: i32, %arg1: memref<1x18x18xf32, #tpu.memory_space<vmem>>, %arg2: memref<8x10xf32, #tpu.memory_space<smem>>, %arg3: memref<16x16xf32, #tpu.memory_space<vmem>>) attributes {dimension_semantics = [#tpu.dimension_semantics<arbitrary>], iteration_bounds = array<i64: 2>, scalar_prefetch = 0 : i64, scratch_operands = 0 : i64, tpu.core_type = #tpu.core_type<tc>, window_params = [{transform_indices = @transform_0, window_bounds = array<i64: 1, 18, 18>}, {transform_indices = @transform_1, window_bounds = array<i64: 8, 10>}, {pipeline_mode = #tpu.pipeline_mode<synchronous>, transform_indices = @transform_2, window_bounds = array<i64: 16, 16>}]} {
    %c0_i32 = arith.constant 0 : i32
    %0 = arith.cmpi eq, %arg0, %c0_i32 : i32
    %1 = arith.extui %0 : i1 to i32
    %c0_i32_0 = arith.constant 0 : i32
    %2 = arith.cmpi ne, %1, %c0_i32_0 : i32
    scf.if %2 {
      %cst_243 = arith.constant 0.000000e+00 : f32
      %438 = vector.broadcast %cst_243 : f32 to vector<16x16xf32>
      %c0_244 = arith.constant 0 : index
      %c0_245 = arith.constant 0 : index
      %439 = vector.load %arg3[%c0_244, %c0_245] : memref<16x16xf32, #tpu.memory_space<vmem>>, vector<16x16xf32>
      tpu.vector_store %arg3[%c0_244, %c0_245], %438 {strides = array<i32>} : memref<16x16xf32, #tpu.memory_space<vmem>>, vector<16x16xf32>,
    } else {
    }
    %c0 = arith.constant 0 : index
    %c0_1 = arith.constant 0 : index
    %c0_2 = arith.constant 0 : index
    %3 = vector.load %arg1[%c0, %c0_1, %c0_2] : memref<1x18x18xf32, #tpu.memory_space<vmem>>, vector<1x18x18xf32>
    %4 = vector.shape_cast %3 : vector<1x18x18xf32> to vector<18x18xf32>
    %cst = arith.constant 0.000000e+00 : f32
    %5 = vector.broadcast %cst : f32 to vector<16x16xf32>
    %cst_3 = arith.constant 0.000000e+00 : f32
    %6 = vector.broadcast %cst_3 : f32 to vector<16x16xf32>
    %cst_4 = arith.constant 0.000000e+00 : f32
    %7 = vector.broadcast %cst_4 : f32 to vector<16x16xf32>
    %cst_5 = arith.constant 0.000000e+00 : f32
    %8 = vector.broadcast %cst_5 : f32 to vector<16x16xf32>
    %cst_6 = arith.constant 0.000000e+00 : f32
    %9 = vector.broadcast %cst_6 : f32 to vector<16x16xf32>
    %cst_7 = arith.constant 0.000000e+00 : f32
    %10 = vector.broadcast %cst_7 : f32 to vector<16x16xf32>
    %cst_8 = arith.constant 0.000000e+00 : f32
    %11 = vector.broadcast %cst_8 : f32 to vector<16x16xf32>
    %cst_9 = arith.constant 0.000000e+00 : f32
    %12 = vector.broadcast %cst_9 : f32 to vector<16x16xf32>
    %13 = vector.extract_strided_slice %4 {offsets = [0, 0], sizes = [16, 16], strides = [1, 1]} : vector<18x18xf32> to vector<16x16xf32>
    %c0_10 = arith.constant 0 : index
    %c0_11 = arith.constant 0 : index
    %14 = memref.load %arg2[%c0_10, %c0_11] : memref<8x10xf32, #tpu.memory_space<smem>>
    %15 = vector.broadcast %14 : f32 to vector<16x16xf32>
    %16 = arith.mulf %15, %13 : vector<16x16xf32>
    %17 = arith.addf %5, %16 : vector<16x16xf32>
    %c1 = arith.constant 1 : index
    %c0_12 = arith.constant 0 : index
    %18 = memref.load %arg2[%c1, %c0_12] : memref<8x10xf32, #tpu.memory_space<smem>>
    %19 = vector.broadcast %18 : f32 to vector<16x16xf32>
    %20 = arith.mulf %19, %13 : vector<16x16xf32>
    %21 = arith.addf %6, %20 : vector<16x16xf32>
    %c2 = arith.constant 2 : index
    %c0_13 = arith.constant 0 : index
    %22 = memref.load %arg2[%c2, %c0_13] : memref<8x10xf32, #tpu.memory_space<smem>>
    %23 = vector.broadcast %22 : f32 to vector<16x16xf32>
    %24 = arith.mulf %23, %13 : vector<16x16xf32>
    %25 = arith.addf %7, %24 : vector<16x16xf32>
    %c3 = arith.constant 3 : index
    %c0_14 = arith.constant 0 : index
    %26 = memref.load %arg2[%c3, %c0_14] : memref<8x10xf32, #tpu.memory_space<smem>>
    %27 = vector.broadcast %26 : f32 to vector<16x16xf32>
    %28 = arith.mulf %27, %13 : vector<16x16xf32>
    %29 = arith.addf %8, %28 : vector<16x16xf32>
    %c4 = arith.constant 4 : index
    %c0_15 = arith.constant 0 : index
    %30 = memref.load %arg2[%c4, %c0_15] : memref<8x10xf32, #tpu.memory_space<smem>>
    %31 = vector.broadcast %30 : f32 to vector<16x16xf32>
    %32 = arith.mulf %31, %13 : vector<16x16xf32>
    %33 = arith.addf %9, %32 : vector<16x16xf32>
    %c5 = arith.constant 5 : index
    %c0_16 = arith.constant 0 : index
    %34 = memref.load %arg2[%c5, %c0_16] : memref<8x10xf32, #tpu.memory_space<smem>>
    %35 = vector.broadcast %34 : f32 to vector<16x16xf32>
    %36 = arith.mulf %35, %13 : vector<16x16xf32>
    %37 = arith.addf %10, %36 : vector<16x16xf32>
    %c6 = arith.constant 6 : index
    %c0_17 = arith.constant 0 : index
    %38 = memref.load %arg2[%c6, %c0_17] : memref<8x10xf32, #tpu.memory_space<smem>>
    %39 = vector.broadcast %38 : f32 to vector<16x16xf32>
    %40 = arith.mulf %39, %13 : vector<16x16xf32>
    %41 = arith.addf %11, %40 : vector<16x16xf32>
    %c7 = arith.constant 7 : index
    %c0_18 = arith.constant 0 : index
    %42 = memref.load %arg2[%c7, %c0_18] : memref<8x10xf32, #tpu.memory_space<smem>>
    %43 = vector.broadcast %42 : f32 to vector<16x16xf32>
    %44 = arith.mulf %43, %13 : vector<16x16xf32>
    %45 = arith.addf %12, %44 : vector<16x16xf32>
    %46 = vector.extract_strided_slice %4 {offsets = [0, 1], sizes = [16, 16], strides = [1, 1]} : vector<18x18xf32> to vector<16x16xf32>
    %c0_19 = arith.constant 0 : index
    %c1_20 = arith.constant 1 : index
    %47 = memref.load %arg2[%c0_19, %c1_20] : memref<8x10xf32, #tpu.memory_space<smem>>
    %48 = vector.broadcast %47 : f32 to vector<16x16xf32>
    %49 = arith.mulf %48, %46 : vector<16x16xf32>
    %50 = arith.addf %17, %49 : vector<16x16xf32>
    %c1_21 = arith.constant 1 : index
    %c1_22 = arith.constant 1 : index
    %51 = memref.load %arg2[%c1_21, %c1_22] : memref<8x10xf32, #tpu.memory_space<smem>>
    %52 = vector.broadcast %51 : f32 to vector<16x16xf32>
    %53 = arith.mulf %52, %46 : vector<16x16xf32>
    %54 = arith.addf %21, %53 : vector<16x16xf32>
    %c2_23 = arith.constant 2 : index
    %c1_24 = arith.constant 1 : index
    %55 = memref.load %arg2[%c2_23, %c1_24] : memref<8x10xf32, #tpu.memory_space<smem>>
    %56 = vector.broadcast %55 : f32 to vector<16x16xf32>
    %57 = arith.mulf %56, %46 : vector<16x16xf32>
    %58 = arith.addf %25, %57 : vector<16x16xf32>
    %c3_25 = arith.constant 3 : index
    %c1_26 = arith.constant 1 : index
    %59 = memref.load %arg2[%c3_25, %c1_26] : memref<8x10xf32, #tpu.memory_space<smem>>
    %60 = vector.broadcast %59 : f32 to vector<16x16xf32>
    %61 = arith.mulf %60, %46 : vector<16x16xf32>
    %62 = arith.addf %29, %61 : vector<16x16xf32>
    %c4_27 = arith.constant 4 : index
    %c1_28 = arith.constant 1 : index
    %63 = memref.load %arg2[%c4_27, %c1_28] : memref<8x10xf32, #tpu.memory_space<smem>>
    %64 = vector.broadcast %63 : f32 to vector<16x16xf32>
    %65 = arith.mulf %64, %46 : vector<16x16xf32>
    %66 = arith.addf %33, %65 : vector<16x16xf32>
    %c5_29 = arith.constant 5 : index
    %c1_30 = arith.constant 1 : index
    %67 = memref.load %arg2[%c5_29, %c1_30] : memref<8x10xf32, #tpu.memory_space<smem>>
    %68 = vector.broadcast %67 : f32 to vector<16x16xf32>
    %69 = arith.mulf %68, %46 : vector<16x16xf32>
    %70 = arith.addf %37, %69 : vector<16x16xf32>
    %c6_31 = arith.constant 6 : index
    %c1_32 = arith.constant 1 : index
    %71 = memref.load %arg2[%c6_31, %c1_32] : memref<8x10xf32, #tpu.memory_space<smem>>
    %72 = vector.broadcast %71 : f32 to vector<16x16xf32>
    %73 = arith.mulf %72, %46 : vector<16x16xf32>
    %74 = arith.addf %41, %73 : vector<16x16xf32>
    %c7_33 = arith.constant 7 : index
    %c1_34 = arith.constant 1 : index
    %75 = memref.load %arg2[%c7_33, %c1_34] : memref<8x10xf32, #tpu.memory_space<smem>>
    %76 = vector.broadcast %75 : f32 to vector<16x16xf32>
    %77 = arith.mulf %76, %46 : vector<16x16xf32>
    %78 = arith.addf %45, %77 : vector<16x16xf32>
    %79 = vector.extract_strided_slice %4 {offsets = [0, 2], sizes = [16, 16], strides = [1, 1]} : vector<18x18xf32> to vector<16x16xf32>
    %c0_35 = arith.constant 0 : index
    %c2_36 = arith.constant 2 : index
    %80 = memref.load %arg2[%c0_35, %c2_36] : memref<8x10xf32, #tpu.memory_space<smem>>
    %81 = vector.broadcast %80 : f32 to vector<16x16xf32>
    %82 = arith.mulf %81, %79 : vector<16x16xf32>
    %83 = arith.addf %50, %82 : vector<16x16xf32>
    %c1_37 = arith.constant 1 : index
    %c2_38 = arith.constant 2 : index
    %84 = memref.load %arg2[%c1_37, %c2_38] : memref<8x10xf32, #tpu.memory_space<smem>>
    %85 = vector.broadcast %84 : f32 to vector<16x16xf32>
    %86 = arith.mulf %85, %79 : vector<16x16xf32>
    %87 = arith.addf %54, %86 : vector<16x16xf32>
    %c2_39 = arith.constant 2 : index
    %c2_40 = arith.constant 2 : index
    %88 = memref.load %arg2[%c2_39, %c2_40] : memref<8x10xf32, #tpu.memory_space<smem>>
    %89 = vector.broadcast %88 : f32 to vector<16x16xf32>
    %90 = arith.mulf %89, %79 : vector<16x16xf32>
    %91 = arith.addf %58, %90 : vector<16x16xf32>
    %c3_41 = arith.constant 3 : index
    %c2_42 = arith.constant 2 : index
    %92 = memref.load %arg2[%c3_41, %c2_42] : memref<8x10xf32, #tpu.memory_space<smem>>
    %93 = vector.broadcast %92 : f32 to vector<16x16xf32>
    %94 = arith.mulf %93, %79 : vector<16x16xf32>
    %95 = arith.addf %62, %94 : vector<16x16xf32>
    %c4_43 = arith.constant 4 : index
    %c2_44 = arith.constant 2 : index
    %96 = memref.load %arg2[%c4_43, %c2_44] : memref<8x10xf32, #tpu.memory_space<smem>>
    %97 = vector.broadcast %96 : f32 to vector<16x16xf32>
    %98 = arith.mulf %97, %79 : vector<16x16xf32>
    %99 = arith.addf %66, %98 : vector<16x16xf32>
    %c5_45 = arith.constant 5 : index
    %c2_46 = arith.constant 2 : index
    %100 = memref.load %arg2[%c5_45, %c2_46] : memref<8x10xf32, #tpu.memory_space<smem>>
    %101 = vector.broadcast %100 : f32 to vector<16x16xf32>
    %102 = arith.mulf %101, %79 : vector<16x16xf32>
    %103 = arith.addf %70, %102 : vector<16x16xf32>
    %c6_47 = arith.constant 6 : index
    %c2_48 = arith.constant 2 : index
    %104 = memref.load %arg2[%c6_47, %c2_48] : memref<8x10xf32, #tpu.memory_space<smem>>
    %105 = vector.broadcast %104 : f32 to vector<16x16xf32>
    %106 = arith.mulf %105, %79 : vector<16x16xf32>
    %107 = arith.addf %74, %106 : vector<16x16xf32>
    %c7_49 = arith.constant 7 : index
    %c2_50 = arith.constant 2 : index
    %108 = memref.load %arg2[%c7_49, %c2_50] : memref<8x10xf32, #tpu.memory_space<smem>>
    %109 = vector.broadcast %108 : f32 to vector<16x16xf32>
    %110 = arith.mulf %109, %79 : vector<16x16xf32>
    %111 = arith.addf %78, %110 : vector<16x16xf32>
    %112 = vector.extract_strided_slice %4 {offsets = [1, 0], sizes = [16, 16], strides = [1, 1]} : vector<18x18xf32> to vector<16x16xf32>
    %c0_51 = arith.constant 0 : index
    %c3_52 = arith.constant 3 : index
    %113 = memref.load %arg2[%c0_51, %c3_52] : memref<8x10xf32, #tpu.memory_space<smem>>
    %114 = vector.broadcast %113 : f32 to vector<16x16xf32>
    %115 = arith.mulf %114, %112 : vector<16x16xf32>
    %116 = arith.addf %83, %115 : vector<16x16xf32>
    %c1_53 = arith.constant 1 : index
    %c3_54 = arith.constant 3 : index
    %117 = memref.load %arg2[%c1_53, %c3_54] : memref<8x10xf32, #tpu.memory_space<smem>>
    %118 = vector.broadcast %117 : f32 to vector<16x16xf32>
    %119 = arith.mulf %118, %112 : vector<16x16xf32>
    %120 = arith.addf %87, %119 : vector<16x16xf32>
    %c2_55 = arith.constant 2 : index
    %c3_56 = arith.constant 3 : index
    %121 = memref.load %arg2[%c2_55, %c3_56] : memref<8x10xf32, #tpu.memory_space<smem>>
    %122 = vector.broadcast %121 : f32 to vector<16x16xf32>
    %123 = arith.mulf %122, %112 : vector<16x16xf32>
    %124 = arith.addf %91, %123 : vector<16x16xf32>
    %c3_57 = arith.constant 3 : index
    %c3_58 = arith.constant 3 : index
    %125 = memref.load %arg2[%c3_57, %c3_58] : memref<8x10xf32, #tpu.memory_space<smem>>
    %126 = vector.broadcast %125 : f32 to vector<16x16xf32>
    %127 = arith.mulf %126, %112 : vector<16x16xf32>
    %128 = arith.addf %95, %127 : vector<16x16xf32>
    %c4_59 = arith.constant 4 : index
    %c3_60 = arith.constant 3 : index
    %129 = memref.load %arg2[%c4_59, %c3_60] : memref<8x10xf32, #tpu.memory_space<smem>>
    %130 = vector.broadcast %129 : f32 to vector<16x16xf32>
    %131 = arith.mulf %130, %112 : vector<16x16xf32>
    %132 = arith.addf %99, %131 : vector<16x16xf32>
    %c5_61 = arith.constant 5 : index
    %c3_62 = arith.constant 3 : index
    %133 = memref.load %arg2[%c5_61, %c3_62] : memref<8x10xf32, #tpu.memory_space<smem>>
    %134 = vector.broadcast %133 : f32 to vector<16x16xf32>
    %135 = arith.mulf %134, %112 : vector<16x16xf32>
    %136 = arith.addf %103, %135 : vector<16x16xf32>
    %c6_63 = arith.constant 6 : index
    %c3_64 = arith.constant 3 : index
    %137 = memref.load %arg2[%c6_63, %c3_64] : memref<8x10xf32, #tpu.memory_space<smem>>
    %138 = vector.broadcast %137 : f32 to vector<16x16xf32>
    %139 = arith.mulf %138, %112 : vector<16x16xf32>
    %140 = arith.addf %107, %139 : vector<16x16xf32>
    %c7_65 = arith.constant 7 : index
    %c3_66 = arith.constant 3 : index
    %141 = memref.load %arg2[%c7_65, %c3_66] : memref<8x10xf32, #tpu.memory_space<smem>>
    %142 = vector.broadcast %141 : f32 to vector<16x16xf32>
    %143 = arith.mulf %142, %112 : vector<16x16xf32>
    %144 = arith.addf %111, %143 : vector<16x16xf32>
    %145 = vector.extract_strided_slice %4 {offsets = [1, 1], sizes = [16, 16], strides = [1, 1]} : vector<18x18xf32> to vector<16x16xf32>
    %c0_67 = arith.constant 0 : index
    %c4_68 = arith.constant 4 : index
    %146 = memref.load %arg2[%c0_67, %c4_68] : memref<8x10xf32, #tpu.memory_space<smem>>
    %147 = vector.broadcast %146 : f32 to vector<16x16xf32>
    %148 = arith.mulf %147, %145 : vector<16x16xf32>
    %149 = arith.addf %116, %148 : vector<16x16xf32>
    %c1_69 = arith.constant 1 : index
    %c4_70 = arith.constant 4 : index
    %150 = memref.load %arg2[%c1_69, %c4_70] : memref<8x10xf32, #tpu.memory_space<smem>>
    %151 = vector.broadcast %150 : f32 to vector<16x16xf32>
    %152 = arith.mulf %151, %145 : vector<16x16xf32>
    %153 = arith.addf %120, %152 : vector<16x16xf32>
    %c2_71 = arith.constant 2 : index
    %c4_72 = arith.constant 4 : index
    %154 = memref.load %arg2[%c2_71, %c4_72] : memref<8x10xf32, #tpu.memory_space<smem>>
    %155 = vector.broadcast %154 : f32 to vector<16x16xf32>
    %156 = arith.mulf %155, %145 : vector<16x16xf32>
    %157 = arith.addf %124, %156 : vector<16x16xf32>
    %c3_73 = arith.constant 3 : index
    %c4_74 = arith.constant 4 : index
    %158 = memref.load %arg2[%c3_73, %c4_74] : memref<8x10xf32, #tpu.memory_space<smem>>
    %159 = vector.broadcast %158 : f32 to vector<16x16xf32>
    %160 = arith.mulf %159, %145 : vector<16x16xf32>
    %161 = arith.addf %128, %160 : vector<16x16xf32>
    %c4_75 = arith.constant 4 : index
    %c4_76 = arith.constant 4 : index
    %162 = memref.load %arg2[%c4_75, %c4_76] : memref<8x10xf32, #tpu.memory_space<smem>>
    %163 = vector.broadcast %162 : f32 to vector<16x16xf32>
    %164 = arith.mulf %163, %145 : vector<16x16xf32>
    %165 = arith.addf %132, %164 : vector<16x16xf32>
    %c5_77 = arith.constant 5 : index
    %c4_78 = arith.constant 4 : index
    %166 = memref.load %arg2[%c5_77, %c4_78] : memref<8x10xf32, #tpu.memory_space<smem>>
    %167 = vector.broadcast %166 : f32 to vector<16x16xf32>
    %168 = arith.mulf %167, %145 : vector<16x16xf32>
    %169 = arith.addf %136, %168 : vector<16x16xf32>
    %c6_79 = arith.constant 6 : index
    %c4_80 = arith.constant 4 : index
    %170 = memref.load %arg2[%c6_79, %c4_80] : memref<8x10xf32, #tpu.memory_space<smem>>
    %171 = vector.broadcast %170 : f32 to vector<16x16xf32>
    %172 = arith.mulf %171, %145 : vector<16x16xf32>
    %173 = arith.addf %140, %172 : vector<16x16xf32>
    %c7_81 = arith.constant 7 : index
    %c4_82 = arith.constant 4 : index
    %174 = memref.load %arg2[%c7_81, %c4_82] : memref<8x10xf32, #tpu.memory_space<smem>>
    %175 = vector.broadcast %174 : f32 to vector<16x16xf32>
    %176 = arith.mulf %175, %145 : vector<16x16xf32>
    %177 = arith.addf %144, %176 : vector<16x16xf32>
    %178 = vector.extract_strided_slice %4 {offsets = [1, 2], sizes = [16, 16], strides = [1, 1]} : vector<18x18xf32> to vector<16x16xf32>
    %c0_83 = arith.constant 0 : index
    %c5_84 = arith.constant 5 : index
    %179 = memref.load %arg2[%c0_83, %c5_84] : memref<8x10xf32, #tpu.memory_space<smem>>
    %180 = vector.broadcast %179 : f32 to vector<16x16xf32>
    %181 = arith.mulf %180, %178 : vector<16x16xf32>
    %182 = arith.addf %149, %181 : vector<16x16xf32>
    %c1_85 = arith.constant 1 : index
    %c5_86 = arith.constant 5 : index
    %183 = memref.load %arg2[%c1_85, %c5_86] : memref<8x10xf32, #tpu.memory_space<smem>>
    %184 = vector.broadcast %183 : f32 to vector<16x16xf32>
    %185 = arith.mulf %184, %178 : vector<16x16xf32>
    %186 = arith.addf %153, %185 : vector<16x16xf32>
    %c2_87 = arith.constant 2 : index
    %c5_88 = arith.constant 5 : index
    %187 = memref.load %arg2[%c2_87, %c5_88] : memref<8x10xf32, #tpu.memory_space<smem>>
    %188 = vector.broadcast %187 : f32 to vector<16x16xf32>
    %189 = arith.mulf %188, %178 : vector<16x16xf32>
    %190 = arith.addf %157, %189 : vector<16x16xf32>
    %c3_89 = arith.constant 3 : index
    %c5_90 = arith.constant 5 : index
    %191 = memref.load %arg2[%c3_89, %c5_90] : memref<8x10xf32, #tpu.memory_space<smem>>
    %192 = vector.broadcast %191 : f32 to vector<16x16xf32>
    %193 = arith.mulf %192, %178 : vector<16x16xf32>
    %194 = arith.addf %161, %193 : vector<16x16xf32>
    %c4_91 = arith.constant 4 : index
    %c5_92 = arith.constant 5 : index
    %195 = memref.load %arg2[%c4_91, %c5_92] : memref<8x10xf32, #tpu.memory_space<smem>>
    %196 = vector.broadcast %195 : f32 to vector<16x16xf32>
    %197 = arith.mulf %196, %178 : vector<16x16xf32>
    %198 = arith.addf %165, %197 : vector<16x16xf32>
    %c5_93 = arith.constant 5 : index
    %c5_94 = arith.constant 5 : index
    %199 = memref.load %arg2[%c5_93, %c5_94] : memref<8x10xf32, #tpu.memory_space<smem>>
    %200 = vector.broadcast %199 : f32 to vector<16x16xf32>
    %201 = arith.mulf %200, %178 : vector<16x16xf32>
    %202 = arith.addf %169, %201 : vector<16x16xf32>
    %c6_95 = arith.constant 6 : index
    %c5_96 = arith.constant 5 : index
    %203 = memref.load %arg2[%c6_95, %c5_96] : memref<8x10xf32, #tpu.memory_space<smem>>
    %204 = vector.broadcast %203 : f32 to vector<16x16xf32>
    %205 = arith.mulf %204, %178 : vector<16x16xf32>
    %206 = arith.addf %173, %205 : vector<16x16xf32>
    %c7_97 = arith.constant 7 : index
    %c5_98 = arith.constant 5 : index
    %207 = memref.load %arg2[%c7_97, %c5_98] : memref<8x10xf32, #tpu.memory_space<smem>>
    %208 = vector.broadcast %207 : f32 to vector<16x16xf32>
    %209 = arith.mulf %208, %178 : vector<16x16xf32>
    %210 = arith.addf %177, %209 : vector<16x16xf32>
    %211 = vector.extract_strided_slice %4 {offsets = [2, 0], sizes = [16, 16], strides = [1, 1]} : vector<18x18xf32> to vector<16x16xf32>
    %c0_99 = arith.constant 0 : index
    %c6_100 = arith.constant 6 : index
    %212 = memref.load %arg2[%c0_99, %c6_100] : memref<8x10xf32, #tpu.memory_space<smem>>
    %213 = vector.broadcast %212 : f32 to vector<16x16xf32>
    %214 = arith.mulf %213, %211 : vector<16x16xf32>
    %215 = arith.addf %182, %214 : vector<16x16xf32>
    %c1_101 = arith.constant 1 : index
    %c6_102 = arith.constant 6 : index
    %216 = memref.load %arg2[%c1_101, %c6_102] : memref<8x10xf32, #tpu.memory_space<smem>>
    %217 = vector.broadcast %216 : f32 to vector<16x16xf32>
    %218 = arith.mulf %217, %211 : vector<16x16xf32>
    %219 = arith.addf %186, %218 : vector<16x16xf32>
    %c2_103 = arith.constant 2 : index
    %c6_104 = arith.constant 6 : index
    %220 = memref.load %arg2[%c2_103, %c6_104] : memref<8x10xf32, #tpu.memory_space<smem>>
    %221 = vector.broadcast %220 : f32 to vector<16x16xf32>
    %222 = arith.mulf %221, %211 : vector<16x16xf32>
    %223 = arith.addf %190, %222 : vector<16x16xf32>
    %c3_105 = arith.constant 3 : index
    %c6_106 = arith.constant 6 : index
    %224 = memref.load %arg2[%c3_105, %c6_106] : memref<8x10xf32, #tpu.memory_space<smem>>
    %225 = vector.broadcast %224 : f32 to vector<16x16xf32>
    %226 = arith.mulf %225, %211 : vector<16x16xf32>
    %227 = arith.addf %194, %226 : vector<16x16xf32>
    %c4_107 = arith.constant 4 : index
    %c6_108 = arith.constant 6 : index
    %228 = memref.load %arg2[%c4_107, %c6_108] : memref<8x10xf32, #tpu.memory_space<smem>>
    %229 = vector.broadcast %228 : f32 to vector<16x16xf32>
    %230 = arith.mulf %229, %211 : vector<16x16xf32>
    %231 = arith.addf %198, %230 : vector<16x16xf32>
    %c5_109 = arith.constant 5 : index
    %c6_110 = arith.constant 6 : index
    %232 = memref.load %arg2[%c5_109, %c6_110] : memref<8x10xf32, #tpu.memory_space<smem>>
    %233 = vector.broadcast %232 : f32 to vector<16x16xf32>
    %234 = arith.mulf %233, %211 : vector<16x16xf32>
    %235 = arith.addf %202, %234 : vector<16x16xf32>
    %c6_111 = arith.constant 6 : index
    %c6_112 = arith.constant 6 : index
    %236 = memref.load %arg2[%c6_111, %c6_112] : memref<8x10xf32, #tpu.memory_space<smem>>
    %237 = vector.broadcast %236 : f32 to vector<16x16xf32>
    %238 = arith.mulf %237, %211 : vector<16x16xf32>
    %239 = arith.addf %206, %238 : vector<16x16xf32>
    %c7_113 = arith.constant 7 : index
    %c6_114 = arith.constant 6 : index
    %240 = memref.load %arg2[%c7_113, %c6_114] : memref<8x10xf32, #tpu.memory_space<smem>>
    %241 = vector.broadcast %240 : f32 to vector<16x16xf32>
    %242 = arith.mulf %241, %211 : vector<16x16xf32>
    %243 = arith.addf %210, %242 : vector<16x16xf32>
    %244 = vector.extract_strided_slice %4 {offsets = [2, 1], sizes = [16, 16], strides = [1, 1]} : vector<18x18xf32> to vector<16x16xf32>
    %c0_115 = arith.constant 0 : index
    %c7_116 = arith.constant 7 : index
    %245 = memref.load %arg2[%c0_115, %c7_116] : memref<8x10xf32, #tpu.memory_space<smem>>
    %246 = vector.broadcast %245 : f32 to vector<16x16xf32>
    %247 = arith.mulf %246, %244 : vector<16x16xf32>
    %248 = arith.addf %215, %247 : vector<16x16xf32>
    %c1_117 = arith.constant 1 : index
    %c7_118 = arith.constant 7 : index
    %249 = memref.load %arg2[%c1_117, %c7_118] : memref<8x10xf32, #tpu.memory_space<smem>>
    %250 = vector.broadcast %249 : f32 to vector<16x16xf32>
    %251 = arith.mulf %250, %244 : vector<16x16xf32>
    %252 = arith.addf %219, %251 : vector<16x16xf32>
    %c2_119 = arith.constant 2 : index
    %c7_120 = arith.constant 7 : index
    %253 = memref.load %arg2[%c2_119, %c7_120] : memref<8x10xf32, #tpu.memory_space<smem>>
    %254 = vector.broadcast %253 : f32 to vector<16x16xf32>
    %255 = arith.mulf %254, %244 : vector<16x16xf32>
    %256 = arith.addf %223, %255 : vector<16x16xf32>
    %c3_121 = arith.constant 3 : index
    %c7_122 = arith.constant 7 : index
    %257 = memref.load %arg2[%c3_121, %c7_122] : memref<8x10xf32, #tpu.memory_space<smem>>
    %258 = vector.broadcast %257 : f32 to vector<16x16xf32>
    %259 = arith.mulf %258, %244 : vector<16x16xf32>
    %260 = arith.addf %227, %259 : vector<16x16xf32>
    %c4_123 = arith.constant 4 : index
    %c7_124 = arith.constant 7 : index
    %261 = memref.load %arg2[%c4_123, %c7_124] : memref<8x10xf32, #tpu.memory_space<smem>>
    %262 = vector.broadcast %261 : f32 to vector<16x16xf32>
    %263 = arith.mulf %262, %244 : vector<16x16xf32>
    %264 = arith.addf %231, %263 : vector<16x16xf32>
    %c5_125 = arith.constant 5 : index
    %c7_126 = arith.constant 7 : index
    %265 = memref.load %arg2[%c5_125, %c7_126] : memref<8x10xf32, #tpu.memory_space<smem>>
    %266 = vector.broadcast %265 : f32 to vector<16x16xf32>
    %267 = arith.mulf %266, %244 : vector<16x16xf32>
    %268 = arith.addf %235, %267 : vector<16x16xf32>
    %c6_127 = arith.constant 6 : index
    %c7_128 = arith.constant 7 : index
    %269 = memref.load %arg2[%c6_127, %c7_128] : memref<8x10xf32, #tpu.memory_space<smem>>
    %270 = vector.broadcast %269 : f32 to vector<16x16xf32>
    %271 = arith.mulf %270, %244 : vector<16x16xf32>
    %272 = arith.addf %239, %271 : vector<16x16xf32>
    %c7_129 = arith.constant 7 : index
    %c7_130 = arith.constant 7 : index
    %273 = memref.load %arg2[%c7_129, %c7_130] : memref<8x10xf32, #tpu.memory_space<smem>>
    %274 = vector.broadcast %273 : f32 to vector<16x16xf32>
    %275 = arith.mulf %274, %244 : vector<16x16xf32>
    %276 = arith.addf %243, %275 : vector<16x16xf32>
    %277 = vector.extract_strided_slice %4 {offsets = [2, 2], sizes = [16, 16], strides = [1, 1]} : vector<18x18xf32> to vector<16x16xf32>
    %c0_131 = arith.constant 0 : index
    %c8 = arith.constant 8 : index
    %278 = memref.load %arg2[%c0_131, %c8] : memref<8x10xf32, #tpu.memory_space<smem>>
    %279 = vector.broadcast %278 : f32 to vector<16x16xf32>
    %280 = arith.mulf %279, %277 : vector<16x16xf32>
    %281 = arith.addf %248, %280 : vector<16x16xf32>
    %c1_132 = arith.constant 1 : index
    %c8_133 = arith.constant 8 : index
    %282 = memref.load %arg2[%c1_132, %c8_133] : memref<8x10xf32, #tpu.memory_space<smem>>
    %283 = vector.broadcast %282 : f32 to vector<16x16xf32>
    %284 = arith.mulf %283, %277 : vector<16x16xf32>
    %285 = arith.addf %252, %284 : vector<16x16xf32>
    %c2_134 = arith.constant 2 : index
    %c8_135 = arith.constant 8 : index
    %286 = memref.load %arg2[%c2_134, %c8_135] : memref<8x10xf32, #tpu.memory_space<smem>>
    %287 = vector.broadcast %286 : f32 to vector<16x16xf32>
    %288 = arith.mulf %287, %277 : vector<16x16xf32>
    %289 = arith.addf %256, %288 : vector<16x16xf32>
    %c3_136 = arith.constant 3 : index
    %c8_137 = arith.constant 8 : index
    %290 = memref.load %arg2[%c3_136, %c8_137] : memref<8x10xf32, #tpu.memory_space<smem>>
    %291 = vector.broadcast %290 : f32 to vector<16x16xf32>
    %292 = arith.mulf %291, %277 : vector<16x16xf32>
    %293 = arith.addf %260, %292 : vector<16x16xf32>
    %c4_138 = arith.constant 4 : index
    %c8_139 = arith.constant 8 : index
    %294 = memref.load %arg2[%c4_138, %c8_139] : memref<8x10xf32, #tpu.memory_space<smem>>
    %295 = vector.broadcast %294 : f32 to vector<16x16xf32>
    %296 = arith.mulf %295, %277 : vector<16x16xf32>
    %297 = arith.addf %264, %296 : vector<16x16xf32>
    %c5_140 = arith.constant 5 : index
    %c8_141 = arith.constant 8 : index
    %298 = memref.load %arg2[%c5_140, %c8_141] : memref<8x10xf32, #tpu.memory_space<smem>>
    %299 = vector.broadcast %298 : f32 to vector<16x16xf32>
    %300 = arith.mulf %299, %277 : vector<16x16xf32>
    %301 = arith.addf %268, %300 : vector<16x16xf32>
    %c6_142 = arith.constant 6 : index
    %c8_143 = arith.constant 8 : index
    %302 = memref.load %arg2[%c6_142, %c8_143] : memref<8x10xf32, #tpu.memory_space<smem>>
    %303 = vector.broadcast %302 : f32 to vector<16x16xf32>
    %304 = arith.mulf %303, %277 : vector<16x16xf32>
    %305 = arith.addf %272, %304 : vector<16x16xf32>
    %c7_144 = arith.constant 7 : index
    %c8_145 = arith.constant 8 : index
    %306 = memref.load %arg2[%c7_144, %c8_145] : memref<8x10xf32, #tpu.memory_space<smem>>
    %307 = vector.broadcast %306 : f32 to vector<16x16xf32>
    %308 = arith.mulf %307, %277 : vector<16x16xf32>
    %309 = arith.addf %276, %308 : vector<16x16xf32>
    %c0_146 = arith.constant 0 : index
    %c9 = arith.constant 9 : index
    %310 = memref.load %arg2[%c0_146, %c9] : memref<8x10xf32, #tpu.memory_space<smem>>
    %311 = vector.broadcast %310 : f32 to vector<16x16xf32>
    %312 = arith.addf %281, %311 : vector<16x16xf32>
    %cst_147 = arith.constant 0.000000e+00 : f32
    %313 = vector.broadcast %cst_147 : f32 to vector<16x16xf32>
    %314 = arith.maximumf %312, %313 : vector<16x16xf32>
    %c0_148 = arith.constant 0 : index
    %c0_149 = arith.constant 0 : index
    %315 = vector.load %arg3[%c0_148, %c0_149] : memref<16x16xf32, #tpu.memory_space<vmem>>, vector<1x16xf32>
    %cst_150 = arith.constant dense<0.000000e+00> : vector<16xf32>
    %316 = vector.multi_reduction <add>, %314, %cst_150 [0] : vector<16x16xf32> to vector<16xf32>
    %317 = vector.shape_cast %316 : vector<16xf32> to vector<1x16xf32>
    %318 = arith.addf %315, %317 : vector<1x16xf32>
    %c0_151 = arith.constant 0 : index
    %c0_152 = arith.constant 0 : index
    %319 = vector.load %arg3[%c0_151, %c0_152] : memref<16x16xf32, #tpu.memory_space<vmem>>, vector<1x16xf32>
    tpu.vector_store %arg3[%c0_151, %c0_152], %318 {strides = array<i32>} : memref<16x16xf32, #tpu.memory_space<vmem>>, vector<1x16xf32>,
    %c8_153 = arith.constant 8 : index
    %c0_154 = arith.constant 0 : index
    %320 = vector.load %arg3[%c8_153, %c0_154] : memref<16x16xf32, #tpu.memory_space<vmem>>, vector<1x16xf32>
    %321 = arith.mulf %314, %314 : vector<16x16xf32>
    %cst_155 = arith.constant dense<0.000000e+00> : vector<16xf32>
    %322 = vector.multi_reduction <add>, %321, %cst_155 [0] : vector<16x16xf32> to vector<16xf32>
    %323 = vector.shape_cast %322 : vector<16xf32> to vector<1x16xf32>
    %324 = arith.addf %320, %323 : vector<1x16xf32>
    %c8_156 = arith.constant 8 : index
    %c0_157 = arith.constant 0 : index
    %325 = vector.load %arg3[%c8_156, %c0_157] : memref<16x16xf32, #tpu.memory_space<vmem>>, vector<1x16xf32>
    tpu.vector_store %arg3[%c8_156, %c0_157], %324 {strides = array<i32>} : memref<16x16xf32, #tpu.memory_space<vmem>>, vector<1x16xf32>,
    %c1_158 = arith.constant 1 : index
    %c9_159 = arith.constant 9 : index
    %326 = memref.load %arg2[%c1_158, %c9_159] : memref<8x10xf32, #tpu.memory_space<smem>>
    %327 = vector.broadcast %326 : f32 to vector<16x16xf32>
    %328 = arith.addf %285, %327 : vector<16x16xf32>
    %cst_160 = arith.constant 0.000000e+00 : f32
    %329 = vector.broadcast %cst_160 : f32 to vector<16x16xf32>
    %330 = arith.maximumf %328, %329 : vector<16x16xf32>
    %c1_161 = arith.constant 1 : index
    %c0_162 = arith.constant 0 : index
    %331 = vector.load %arg3[%c1_161, %c0_162] : memref<16x16xf32, #tpu.memory_space<vmem>>, vector<1x16xf32>
    %cst_163 = arith.constant dense<0.000000e+00> : vector<16xf32>
    %332 = vector.multi_reduction <add>, %330, %cst_163 [0] : vector<16x16xf32> to vector<16xf32>
    %333 = vector.shape_cast %332 : vector<16xf32> to vector<1x16xf32>
    %334 = arith.addf %331, %333 : vector<1x16xf32>
    %c1_164 = arith.constant 1 : index
    %c0_165 = arith.constant 0 : index
    %335 = vector.load %arg3[%c1_164, %c0_165] : memref<16x16xf32, #tpu.memory_space<vmem>>, vector<1x16xf32>
    tpu.vector_store %arg3[%c1_164, %c0_165], %334 {strides = array<i32>} : memref<16x16xf32, #tpu.memory_space<vmem>>, vector<1x16xf32>,
    %c9_166 = arith.constant 9 : index
    %c0_167 = arith.constant 0 : index
    %336 = vector.load %arg3[%c9_166, %c0_167] : memref<16x16xf32, #tpu.memory_space<vmem>>, vector<1x16xf32>
    %337 = arith.mulf %330, %330 : vector<16x16xf32>
    %cst_168 = arith.constant dense<0.000000e+00> : vector<16xf32>
    %338 = vector.multi_reduction <add>, %337, %cst_168 [0] : vector<16x16xf32> to vector<16xf32>
    %339 = vector.shape_cast %338 : vector<16xf32> to vector<1x16xf32>
    %340 = arith.addf %336, %339 : vector<1x16xf32>
    %c9_169 = arith.constant 9 : index
    %c0_170 = arith.constant 0 : index
    %341 = vector.load %arg3[%c9_169, %c0_170] : memref<16x16xf32, #tpu.memory_space<vmem>>, vector<1x16xf32>
    tpu.vector_store %arg3[%c9_169, %c0_170], %340 {strides = array<i32>} : memref<16x16xf32, #tpu.memory_space<vmem>>, vector<1x16xf32>,
    %c2_171 = arith.constant 2 : index
    %c9_172 = arith.constant 9 : index
    %342 = memref.load %arg2[%c2_171, %c9_172] : memref<8x10xf32, #tpu.memory_space<smem>>
    %343 = vector.broadcast %342 : f32 to vector<16x16xf32>
    %344 = arith.addf %289, %343 : vector<16x16xf32>
    %cst_173 = arith.constant 0.000000e+00 : f32
    %345 = vector.broadcast %cst_173 : f32 to vector<16x16xf32>
    %346 = arith.maximumf %344, %345 : vector<16x16xf32>
    %c2_174 = arith.constant 2 : index
    %c0_175 = arith.constant 0 : index
    %347 = vector.load %arg3[%c2_174, %c0_175] : memref<16x16xf32, #tpu.memory_space<vmem>>, vector<1x16xf32>
    %cst_176 = arith.constant dense<0.000000e+00> : vector<16xf32>
    %348 = vector.multi_reduction <add>, %346, %cst_176 [0] : vector<16x16xf32> to vector<16xf32>
    %349 = vector.shape_cast %348 : vector<16xf32> to vector<1x16xf32>
    %350 = arith.addf %347, %349 : vector<1x16xf32>
    %c2_177 = arith.constant 2 : index
    %c0_178 = arith.constant 0 : index
    %351 = vector.load %arg3[%c2_177, %c0_178] : memref<16x16xf32, #tpu.memory_space<vmem>>, vector<1x16xf32>
    tpu.vector_store %arg3[%c2_177, %c0_178], %350 {strides = array<i32>} : memref<16x16xf32, #tpu.memory_space<vmem>>, vector<1x16xf32>,
    %c10 = arith.constant 10 : index
    %c0_179 = arith.constant 0 : index
    %352 = vector.load %arg3[%c10, %c0_179] : memref<16x16xf32, #tpu.memory_space<vmem>>, vector<1x16xf32>
    %353 = arith.mulf %346, %346 : vector<16x16xf32>
    %cst_180 = arith.constant dense<0.000000e+00> : vector<16xf32>
    %354 = vector.multi_reduction <add>, %353, %cst_180 [0] : vector<16x16xf32> to vector<16xf32>
    %355 = vector.shape_cast %354 : vector<16xf32> to vector<1x16xf32>
    %356 = arith.addf %352, %355 : vector<1x16xf32>
    %c10_181 = arith.constant 10 : index
    %c0_182 = arith.constant 0 : index
    %357 = vector.load %arg3[%c10_181, %c0_182] : memref<16x16xf32, #tpu.memory_space<vmem>>, vector<1x16xf32>
    tpu.vector_store %arg3[%c10_181, %c0_182], %356 {strides = array<i32>} : memref<16x16xf32, #tpu.memory_space<vmem>>, vector<1x16xf32>,
    %c3_183 = arith.constant 3 : index
    %c9_184 = arith.constant 9 : index
    %358 = memref.load %arg2[%c3_183, %c9_184] : memref<8x10xf32, #tpu.memory_space<smem>>
    %359 = vector.broadcast %358 : f32 to vector<16x16xf32>
    %360 = arith.addf %293, %359 : vector<16x16xf32>
    %cst_185 = arith.constant 0.000000e+00 : f32
    %361 = vector.broadcast %cst_185 : f32 to vector<16x16xf32>
    %362 = arith.maximumf %360, %361 : vector<16x16xf32>
    %c3_186 = arith.constant 3 : index
    %c0_187 = arith.constant 0 : index
    %363 = vector.load %arg3[%c3_186, %c0_187] : memref<16x16xf32, #tpu.memory_space<vmem>>, vector<1x16xf32>
    %cst_188 = arith.constant dense<0.000000e+00> : vector<16xf32>
    %364 = vector.multi_reduction <add>, %362, %cst_188 [0] : vector<16x16xf32> to vector<16xf32>
    %365 = vector.shape_cast %364 : vector<16xf32> to vector<1x16xf32>
    %366 = arith.addf %363, %365 : vector<1x16xf32>
    %c3_189 = arith.constant 3 : index
    %c0_190 = arith.constant 0 : index
    %367 = vector.load %arg3[%c3_189, %c0_190] : memref<16x16xf32, #tpu.memory_space<vmem>>, vector<1x16xf32>
    tpu.vector_store %arg3[%c3_189, %c0_190], %366 {strides = array<i32>} : memref<16x16xf32, #tpu.memory_space<vmem>>, vector<1x16xf32>,
    %c11 = arith.constant 11 : index
    %c0_191 = arith.constant 0 : index
    %368 = vector.load %arg3[%c11, %c0_191] : memref<16x16xf32, #tpu.memory_space<vmem>>, vector<1x16xf32>
    %369 = arith.mulf %362, %362 : vector<16x16xf32>
    %cst_192 = arith.constant dense<0.000000e+00> : vector<16xf32>
    %370 = vector.multi_reduction <add>, %369, %cst_192 [0] : vector<16x16xf32> to vector<16xf32>
    %371 = vector.shape_cast %370 : vector<16xf32> to vector<1x16xf32>
    %372 = arith.addf %368, %371 : vector<1x16xf32>
    %c11_193 = arith.constant 11 : index
    %c0_194 = arith.constant 0 : index
    %373 = vector.load %arg3[%c11_193, %c0_194] : memref<16x16xf32, #tpu.memory_space<vmem>>, vector<1x16xf32>
    tpu.vector_store %arg3[%c11_193, %c0_194], %372 {strides = array<i32>} : memref<16x16xf32, #tpu.memory_space<vmem>>, vector<1x16xf32>,
    %c4_195 = arith.constant 4 : index
    %c9_196 = arith.constant 9 : index
    %374 = memref.load %arg2[%c4_195, %c9_196] : memref<8x10xf32, #tpu.memory_space<smem>>
    %375 = vector.broadcast %374 : f32 to vector<16x16xf32>
    %376 = arith.addf %297, %375 : vector<16x16xf32>
    %cst_197 = arith.constant 0.000000e+00 : f32
    %377 = vector.broadcast %cst_197 : f32 to vector<16x16xf32>
    %378 = arith.maximumf %376, %377 : vector<16x16xf32>
    %c4_198 = arith.constant 4 : index
    %c0_199 = arith.constant 0 : index
    %379 = vector.load %arg3[%c4_198, %c0_199] : memref<16x16xf32, #tpu.memory_space<vmem>>, vector<1x16xf32>
    %cst_200 = arith.constant dense<0.000000e+00> : vector<16xf32>
    %380 = vector.multi_reduction <add>, %378, %cst_200 [0] : vector<16x16xf32> to vector<16xf32>
    %381 = vector.shape_cast %380 : vector<16xf32> to vector<1x16xf32>
    %382 = arith.addf %379, %381 : vector<1x16xf32>
    %c4_201 = arith.constant 4 : index
    %c0_202 = arith.constant 0 : index
    %383 = vector.load %arg3[%c4_201, %c0_202] : memref<16x16xf32, #tpu.memory_space<vmem>>, vector<1x16xf32>
    tpu.vector_store %arg3[%c4_201, %c0_202], %382 {strides = array<i32>} : memref<16x16xf32, #tpu.memory_space<vmem>>, vector<1x16xf32>,
    %c12 = arith.constant 12 : index
    %c0_203 = arith.constant 0 : index
    %384 = vector.load %arg3[%c12, %c0_203] : memref<16x16xf32, #tpu.memory_space<vmem>>, vector<1x16xf32>
    %385 = arith.mulf %378, %378 : vector<16x16xf32>
    %cst_204 = arith.constant dense<0.000000e+00> : vector<16xf32>
    %386 = vector.multi_reduction <add>, %385, %cst_204 [0] : vector<16x16xf32> to vector<16xf32>
    %387 = vector.shape_cast %386 : vector<16xf32> to vector<1x16xf32>
    %388 = arith.addf %384, %387 : vector<1x16xf32>
    %c12_205 = arith.constant 12 : index
    %c0_206 = arith.constant 0 : index
    %389 = vector.load %arg3[%c12_205, %c0_206] : memref<16x16xf32, #tpu.memory_space<vmem>>, vector<1x16xf32>
    tpu.vector_store %arg3[%c12_205, %c0_206], %388 {strides = array<i32>} : memref<16x16xf32, #tpu.memory_space<vmem>>, vector<1x16xf32>,
    %c5_207 = arith.constant 5 : index
    %c9_208 = arith.constant 9 : index
    %390 = memref.load %arg2[%c5_207, %c9_208] : memref<8x10xf32, #tpu.memory_space<smem>>
    %391 = vector.broadcast %390 : f32 to vector<16x16xf32>
    %392 = arith.addf %301, %391 : vector<16x16xf32>
    %cst_209 = arith.constant 0.000000e+00 : f32
    %393 = vector.broadcast %cst_209 : f32 to vector<16x16xf32>
    %394 = arith.maximumf %392, %393 : vector<16x16xf32>
    %c5_210 = arith.constant 5 : index
    %c0_211 = arith.constant 0 : index
    %395 = vector.load %arg3[%c5_210, %c0_211] : memref<16x16xf32, #tpu.memory_space<vmem>>, vector<1x16xf32>
    %cst_212 = arith.constant dense<0.000000e+00> : vector<16xf32>
    %396 = vector.multi_reduction <add>, %394, %cst_212 [0] : vector<16x16xf32> to vector<16xf32>
    %397 = vector.shape_cast %396 : vector<16xf32> to vector<1x16xf32>
    %398 = arith.addf %395, %397 : vector<1x16xf32>
    %c5_213 = arith.constant 5 : index
    %c0_214 = arith.constant 0 : index
    %399 = vector.load %arg3[%c5_213, %c0_214] : memref<16x16xf32, #tpu.memory_space<vmem>>, vector<1x16xf32>
    tpu.vector_store %arg3[%c5_213, %c0_214], %398 {strides = array<i32>} : memref<16x16xf32, #tpu.memory_space<vmem>>, vector<1x16xf32>,
    %c13 = arith.constant 13 : index
    %c0_215 = arith.constant 0 : index
    %400 = vector.load %arg3[%c13, %c0_215] : memref<16x16xf32, #tpu.memory_space<vmem>>, vector<1x16xf32>
    %401 = arith.mulf %394, %394 : vector<16x16xf32>
    %cst_216 = arith.constant dense<0.000000e+00> : vector<16xf32>
    %402 = vector.multi_reduction <add>, %401, %cst_216 [0] : vector<16x16xf32> to vector<16xf32>
    %403 = vector.shape_cast %402 : vector<16xf32> to vector<1x16xf32>
    %404 = arith.addf %400, %403 : vector<1x16xf32>
    %c13_217 = arith.constant 13 : index
    %c0_218 = arith.constant 0 : index
    %405 = vector.load %arg3[%c13_217, %c0_218] : memref<16x16xf32, #tpu.memory_space<vmem>>, vector<1x16xf32>
    tpu.vector_store %arg3[%c13_217, %c0_218], %404 {strides = array<i32>} : memref<16x16xf32, #tpu.memory_space<vmem>>, vector<1x16xf32>,
    %c6_219 = arith.constant 6 : index
    %c9_220 = arith.constant 9 : index
    %406 = memref.load %arg2[%c6_219, %c9_220] : memref<8x10xf32, #tpu.memory_space<smem>>
    %407 = vector.broadcast %406 : f32 to vector<16x16xf32>
    %408 = arith.addf %305, %407 : vector<16x16xf32>
    %cst_221 = arith.constant 0.000000e+00 : f32
    %409 = vector.broadcast %cst_221 : f32 to vector<16x16xf32>
    %410 = arith.maximumf %408, %409 : vector<16x16xf32>
    %c6_222 = arith.constant 6 : index
    %c0_223 = arith.constant 0 : index
    %411 = vector.load %arg3[%c6_222, %c0_223] : memref<16x16xf32, #tpu.memory_space<vmem>>, vector<1x16xf32>
    %cst_224 = arith.constant dense<0.000000e+00> : vector<16xf32>
    %412 = vector.multi_reduction <add>, %410, %cst_224 [0] : vector<16x16xf32> to vector<16xf32>
    %413 = vector.shape_cast %412 : vector<16xf32> to vector<1x16xf32>
    %414 = arith.addf %411, %413 : vector<1x16xf32>
    %c6_225 = arith.constant 6 : index
    %c0_226 = arith.constant 0 : index
    %415 = vector.load %arg3[%c6_225, %c0_226] : memref<16x16xf32, #tpu.memory_space<vmem>>, vector<1x16xf32>
    tpu.vector_store %arg3[%c6_225, %c0_226], %414 {strides = array<i32>} : memref<16x16xf32, #tpu.memory_space<vmem>>, vector<1x16xf32>,
    %c14 = arith.constant 14 : index
    %c0_227 = arith.constant 0 : index
    %416 = vector.load %arg3[%c14, %c0_227] : memref<16x16xf32, #tpu.memory_space<vmem>>, vector<1x16xf32>
    %417 = arith.mulf %410, %410 : vector<16x16xf32>
    %cst_228 = arith.constant dense<0.000000e+00> : vector<16xf32>
    %418 = vector.multi_reduction <add>, %417, %cst_228 [0] : vector<16x16xf32> to vector<16xf32>
    %419 = vector.shape_cast %418 : vector<16xf32> to vector<1x16xf32>
    %420 = arith.addf %416, %419 : vector<1x16xf32>
    %c14_229 = arith.constant 14 : index
    %c0_230 = arith.constant 0 : index
    %421 = vector.load %arg3[%c14_229, %c0_230] : memref<16x16xf32, #tpu.memory_space<vmem>>, vector<1x16xf32>
    tpu.vector_store %arg3[%c14_229, %c0_230], %420 {strides = array<i32>} : memref<16x16xf32, #tpu.memory_space<vmem>>, vector<1x16xf32>,
    %c7_231 = arith.constant 7 : index
    %c9_232 = arith.constant 9 : index
    %422 = memref.load %arg2[%c7_231, %c9_232] : memref<8x10xf32, #tpu.memory_space<smem>>
    %423 = vector.broadcast %422 : f32 to vector<16x16xf32>
    %424 = arith.addf %309, %423 : vector<16x16xf32>
    %cst_233 = arith.constant 0.000000e+00 : f32
    %425 = vector.broadcast %cst_233 : f32 to vector<16x16xf32>
    %426 = arith.maximumf %424, %425 : vector<16x16xf32>
    %c7_234 = arith.constant 7 : index
    %c0_235 = arith.constant 0 : index
    %427 = vector.load %arg3[%c7_234, %c0_235] : memref<16x16xf32, #tpu.memory_space<vmem>>, vector<1x16xf32>
    %cst_236 = arith.constant dense<0.000000e+00> : vector<16xf32>
    %428 = vector.multi_reduction <add>, %426, %cst_236 [0] : vector<16x16xf32> to vector<16xf32>
    %429 = vector.shape_cast %428 : vector<16xf32> to vector<1x16xf32>
    %430 = arith.addf %427, %429 : vector<1x16xf32>
    %c7_237 = arith.constant 7 : index
    %c0_238 = arith.constant 0 : index
    %431 = vector.load %arg3[%c7_237, %c0_238] : memref<16x16xf32, #tpu.memory_space<vmem>>, vector<1x16xf32>
    tpu.vector_store %arg3[%c7_237, %c0_238], %430 {strides = array<i32>} : memref<16x16xf32, #tpu.memory_space<vmem>>, vector<1x16xf32>,
    %c15 = arith.constant 15 : index
    %c0_239 = arith.constant 0 : index
    %432 = vector.load %arg3[%c15, %c0_239] : memref<16x16xf32, #tpu.memory_space<vmem>>, vector<1x16xf32>
    %433 = arith.mulf %426, %426 : vector<16x16xf32>
    %cst_240 = arith.constant dense<0.000000e+00> : vector<16xf32>
    %434 = vector.multi_reduction <add>, %433, %cst_240 [0] : vector<16x16xf32> to vector<16xf32>
    %435 = vector.shape_cast %434 : vector<16xf32> to vector<1x16xf32>
    %436 = arith.addf %432, %435 : vector<1x16xf32>
    %c15_241 = arith.constant 15 : index
    %c0_242 = arith.constant 0 : index
    %437 = vector.load %arg3[%c15_241, %c0_242] : memref<16x16xf32, #tpu.memory_space<vmem>>, vector<1x16xf32>
    tpu.vector_store %arg3[%c15_241, %c0_242], %436 {strides = array<i32>} : memref<16x16xf32, #tpu.memory_space<vmem>>, vector<1x16xf32>,
    return
  }
  func.func @transform_0(%arg0: i32) -> (i32, i32, i32) {
    %c0_i32 = arith.constant 0 : i32
    %c0_i32_0 = arith.constant 0 : i32
    %c0_i32_1 = arith.constant 0 : i32
    return %arg0, %c0_i32, %c0_i32_0 : i32, i32, i32
  }
  func.func @transform_1(%arg0: i32) -> (i32, i32) {
    %c0_i32 = arith.constant 0 : i32
    %c0_i32_0 = arith.constant 0 : i32
    %c0_i32_1 = arith.constant 0 : i32
    return %c0_i32, %c0_i32_0 : i32, i32
  }
  func.func @transform_2(%arg0: i32) -> (i32, i32) {
    %c0_i32 = arith.constant 0 : i32
    %c0_i32_0 = arith.constant 0 : i32
    %c0_i32_1 = arith.constant 0 : i32
    return %c0_i32, %c0_i32_0 : i32, i32
  }
}

</mosaic_0001>

<bundles_post_ra>
// kernel: tpu_custom_call.1
= control target key start
LH: loop header
LB: loop body
LE: loop exit
PB: predicated region body
PF: predicated region fallthrough
CT: control target
= control target key end

     0   :  { %7 = vsyncpa [#allocation4], 0  ;;  %s2848_s0 = inlined_call_operand.vmem [shape: f32[2,18,18], index: 0, kind: input, shape index: {}]   ;;  %s2849_s1 = inlined_call_operand.vmem [shape: f32[8,10], index: 1, kind: input, shape index: {}]   ;;  %s2850_s2 = inlined_call_operand.hbm [shape: f32[16,16], index: 2, kind: output, shape index: {}]  }
   0x1   :  { %8 = vsyncpa [#allocation3], 0  ;;  %s1895_s9 = smov 0  }
   0x2 LB: > { %s1901_s10 = sadd.s32 4294967295, %s1871_s9   ;;  %p1691_p0 = scmp.ge.s32.totalorder %s1871_s9, 1  ;;  %s1871_s9 = sphi %s1895_s9, %s14_s9  }
   0x3   : > { %p87_p1 = scmp.lt.s32.totalorder %s1871_s9, 3  ;;  %s100_s13 = sshll.u32 %s2849_s1, 4  ;;  %s101_s13 = int_to_ptr.vmem [resolvable:$true] %s100_s13 }
   0x4   : > { %p1794_p4 = scmp.eq.s32.totalorder %s1901_s10, 0  ;;  %s1816_s15 = scalar_lea.vmem %s101_s13, 128 }
   0x5   : > { %p1909_p3 = pnand %p1691_p0, %p87_p1  ;;  %p1817_p7 = scmp.ne.s32.totalorder %s101_s13, %s1816_s15 }
   0x6   : > { %p1824_p11 = scmp.lt.s32.totalorder %s101_s13, %s101_s13  ;;  %p1825_p12 = scmp.lt.s32.totalorder %s1816_s15, %s1816_s15 }
   0x7   : > { %p1790_p5 = pneg %p1909_p3 }
   0x8   : > { %p1826_p13 = por %p1825_p12, %p1824_p11 }
   0x9   : > { %p1791_p6 = pnand %p1794_p4, %p1790_p5 }
   0xb   : > { %p1818_p8 = pneg %p1791_p6 }
   0xd   : > { %p1819_p9 = pnand %p1818_p8, %p1817_p7 }
   0xf   : > { %p1820_p10 = pneg %p1819_p9 }
  0x11   : > { %p1827_p2 = pnand %p1826_p13, %p1820_p10 }
  0x13   : > { %1830 = shalt.err (!%p1827_p2)
}
  0x14   : > { %s1873_s16 = smov [#allocation2]   ;;  %121 = sbr.rel (%p1909_p3) target bundleno = 413 (0x19d), region = 28 }
  0x15   : > { %1793 = dma.vmem_to_smem (!%p1791_p6), %s101_s13, 128, %s1873_s16, [#allocation4]  }
  0x1b   : > { %1862 = dma.done.wait (%p1794_p4), [#allocation4], 128  }
  0x1c   : > { %1864 = vsyncadd (%p1794_p4), [#allocation4], 4294967168 }
  0x1d   : > { %127 = sfence }
  0x1e   : > { %p139_p0 = scmp.lt.s32.totalorder %s1901_s10, 1  ;;  %p2852_p1 = scmp.ne.s32.totalorder %s1901_s10, 0 }
  0x1f   : > { %vm148_vm0 = vcmask (!%p2852_p1), 130048   ;;  %v1874_v0 = vmov (!%p2852_p1), 0.0  }
  0x20   : > { %s140_s17 = scalar_select %p139_p0, %s1901_s10, 1 }
  0x21   : > { %147 = sbr.rel (%p2852_p1) target bundleno = 40 (0x28), region = 36  ;;  %149 = vst.msk [vmem:[#allocation5] sm:$0xff] (!%p2852_p1), %vm148_vm0, %v1874_v0  ;;  %150 = vst.msk [vmem:[#allocation5 + $0x8] sm:$0xff] (!%p2852_p1), %vm148_vm0, %v1874_v0 }
  0x22   : > { %s1781_s18 = smul.u32 24, %s140_s17 }
  0x24   : > { %s1929_s21 = scalar_lea.vmem %s2848_s0, %s1781_s18 }
  0x28 PF: > { %s1706_s22 = sld [smem:[#allocation2 + $0x81]]  ;;  %v1934_v1 = vld [vmem:[%s1929_s21] sm:$0xff]  ;;  %v1937_v2 = vld [vmem:[%s1929_s21 + $0x8] sm:$0xff]  ;;  %s1875_s26 = smov 127   ;;  %v1994_v46 = vld [vmem:[%s1929_s21 + $0x10] sm:$0x3] }
  0x29   : > { %s1705_s23 = sld [smem:[#allocation2 + $0x1]]  ;;  %s1713_s3 = sld [smem:[#allocation2 + $0x2]]  ;;  %vm434_vm1 = vcmask 1046528   ;;  %vm907_vm2 = vcmask 1045504   ;;  %vm1379_vm3 = vcmask 130048   ;;  %vm1390_vm4 = vcmask 122880  }
  0x2a   : > { %s1707_s24 = sld [smem:[#allocation2 + $0x101]]  ;;  %s1714_s4 = sld [smem:[#allocation2 + $0x82]] }
  0x2b   : > { %s1708_s25 = sld [smem:[#allocation2 + $0x181]]  ;;  %s1715_s5 = sld [smem:[#allocation2 + $0x102]] }
  0x2c   : > { %s1709_s27 = sld [smem:[#allocation2 + $0x201]]  ;;  %s1716_s6 = sld [smem:[#allocation2 + $0x182]] }
  0x2d   : > { %s1710_s28 = sld [smem:[#allocation2 + $0x281]]  ;;  %s1876_s7 = smov 126  }
  0x2e   : > { %v217_v3 = vstv %s1706_s22  ;;  %s1711_s29 = sld [smem:[#allocation2 + $0x301]]  ;;  %s1717_s8 = sld [smem:[#allocation2 + $0x202]] }
  0x2f   : > { %v218_v4 = vmul.f32 %v217_v3, %v1934_v1  ;;  %v203_v5 = vstv %s1705_s23  ;;  %v219_v7 = vmul.f32 %v217_v3, %v1937_v2  ;;  %s1712_s30 = sld [smem:[#allocation2 + $0x381]]  ;;  %v315_v27 = vstv %s1713_s3  ;;  %s1718_s11 = sld [smem:[#allocation2 + $0x282]] }
  0x30   : > { %v204_v6 = vmul.f32 %v203_v5, %v1934_v1  ;;  %v205_v8 = vmul.f32 %v203_v5, %v1937_v2  ;;  %v231_v9 = vstv %s1707_s24  ;;  %v317_v28 = vmul.f32 %v315_v27, %v1937_v2  ;;  %s1719_s12 = sld [smem:[#allocation2 + $0x302]]  ;;  %s1729_s13 = sld [smem:[#allocation2 + $0x4]] }
  0x31   : > { %222 = vrot.lane.b32.xlu1 %v218_v4, %s1875_s26  ;;  %v233_v10 = vmul.f32 %v231_v9, %v1937_v2  ;;  %v232_v11 = vmul.f32 %v231_v9, %v1934_v1  ;;  %v245_v12 = vstv %s1708_s25  ;;  %v316_v29 = vmul.f32 %v315_v27, %v1934_v1  ;;  %s1720_s14 = sld [smem:[#allocation2 + $0x382]]  ;;  %s1730_s15 = sld [smem:[#allocation2 + $0x84]] }
  0x32   : > { %208 = vrot.lane.b32.xlu0 %v204_v6, %s1875_s26  ;;  %v247_v13 = vmul.f32 %v245_v12, %v1937_v2  ;;  %v246_v14 = vmul.f32 %v245_v12, %v1934_v1  ;;  %v259_v15 = vstv %s1709_s27  ;;  %v329_v30 = vstv %s1714_s4  ;;  %s1731_s16 = sld [smem:[#allocation2 + $0x104]]  ;;  %s1737_s23 = sld [smem:[#allocation2 + $0x5]] }
  0x33   : > { %v261_v16 = vmul.f32 %v259_v15, %v1937_v2  ;;  %v260_v17 = vmul.f32 %v259_v15, %v1934_v1  ;;  %v273_v18 = vstv %s1710_s28  ;;  %v331_v31 = vmul.f32 %v329_v30, %v1937_v2  ;;  %s1732_s17 = sld [smem:[#allocation2 + $0x184]]  ;;  %s1738_s24 = sld [smem:[#allocation2 + $0x85]] }
  0x34   : > { %v275_v19 = vmul.f32 %v273_v18, %v1937_v2  ;;  %v274_v20 = vmul.f32 %v273_v18, %v1934_v1  ;;  %v287_v21 = vstv %s1711_s29  ;;  %v330_v32 = vmul.f32 %v329_v30, %v1934_v1  ;;  %s1733_s18 = sld [smem:[#allocation2 + $0x204]]  ;;  %s1739_s25 = sld [smem:[#allocation2 + $0x105]] }
  0x35   : > { %224 = vrot.lane.b32.xlu1 %v219_v7, %s1875_s26  ;;  %v289_v22 = vmul.f32 %v287_v21, %v1937_v2  ;;  %v288_v23 = vmul.f32 %v287_v21, %v1934_v1  ;;  %v301_v24 = vstv %s1712_s30  ;;  %v343_v33 = vstv %s1715_s5  ;;  %s1734_s19 = sld [smem:[#allocation2 + $0x284]]  ;;  %s1740_s27 = sld [smem:[#allocation2 + $0x185]] }
  0x36   : > { %210 = vrot.lane.b32.xlu0 %v205_v8, %s1875_s26  ;;  %v303_v25 = vmul.f32 %v301_v24, %v1937_v2  ;;  %v302_v26 = vmul.f32 %v301_v24, %v1934_v1  ;;  %v345_v34 = vmul.f32 %v343_v33, %v1937_v2  ;;  %v344_v35 = vmul.f32 %v343_v33, %v1934_v1  ;;  %s1735_s20 = sld [smem:[#allocation2 + $0x304]]  ;;  %s1741_s28 = sld [smem:[#allocation2 + $0x205]] }
  0x37   : > { %v357_v36 = vstv %s1716_s6  ;;  %v371_v39 = vstv %s1717_s8  ;;  %v385_v42 = vstv %s1718_s11  ;;  %v399_v45 = vstv %s1719_s12  ;;  %s1736_s22 = sld [smem:[#allocation2 + $0x384]]  ;;  %s1742_s29 = sld [smem:[#allocation2 + $0x285]] }
  0x38   : > { %v359_v37 = vmul.f32 %v357_v36, %v1937_v2  ;;  %v358_v38 = vmul.f32 %v357_v36, %v1934_v1  ;;  %v373_v40 = vmul.f32 %v371_v39, %v1937_v2  ;;  %v372_v41 = vmul.f32 %v371_v39, %v1934_v1  ;;  %s1743_s30 = sld [smem:[#allocation2 + $0x305]]  ;;  %s1753_s4 = sld [smem:[#allocation2 + $0x7]] }
  0x39   : > { %238 = vrot.lane.b32.xlu1 %v233_v10, %s1875_s26  ;;  %v387_v43 = vmul.f32 %v385_v42, %v1937_v2  ;;  %v386_v44 = vmul.f32 %v385_v42, %v1934_v1  ;;  %v564_v47 = vstv %s1729_s13  ;;  %v401_v48 = vmul.f32 %v399_v45, %v1937_v2  ;;  %s1744_s3 = sld [smem:[#allocation2 + $0x385]]  ;;  %s1754_s5 = sld [smem:[#allocation2 + $0x87]] }
  0x3a   : > { %236 = vrot.lane.b32.xlu0 %v232_v11, %s1875_s26  ;;  %v413_v49 = vstv %s1720_s14  ;;  %v400_v50 = vmul.f32 %v399_v45, %v1934_v1  ;;  %v566_v51 = vmul.f32 %v564_v47, %v1937_v2  ;;  %v567_v52 = vmul.f32 %v564_v47, %v1994_v46  ;;  %s1755_s6 = sld [smem:[#allocation2 + $0x107]]  ;;  %s2123_s11 = sld [smem:[#allocation2 + $0x80]] }
  0x3b   : > { %v585_v53 = vstv %s1730_s15  ;;  %v565_v54 = vmul.f32 %v564_v47, %v1934_v1  ;;  %v415_v55 = vmul.f32 %v413_v49, %v1937_v2  ;;  %v414_v56 = vmul.f32 %v413_v49, %v1934_v1  ;;  %s2117_s8 = sld [smem:[#allocation2 + $0x187]]  ;;  %s2125_s12 = sld [smem:[#allocation2]] }
  0x3c   : > { %v587_v57 = vmul.f32 %v585_v53, %v1937_v2  ;;  %v572_v58 = vrot.slane %v566_v51, 1  ;;  %v574_v59 = vrot.slane %v567_v52, 1  ;;  %v588_v60 = vmul.f32 %v585_v53, %v1994_v46  ;;  %s2138_s13 = sld [smem:[#allocation2 + $0x207]]  ;;  %s2140_s14 = sld [smem:[#allocation2 + $0x100]] }
  0x3d   : > { %252 = vrot.lane.b32.xlu1 %v247_v13, %s1875_s26  ;;  %v606_v61 = vstv %s1731_s16  ;;  %v571_v62 = vrot.slane %v565_v54, 1  ;;  %v586_v63 = vmul.f32 %v585_v53, %v1934_v1  ;;  %v627_v7 = vstv %s1732_s17  ;;  %s2144_s15 = sld [smem:[#allocation2 + $0x180]]  ;;  %s2152_s16 = sld [smem:[#allocation2 + $0x287]] }
  0x3e   : > { %250 = vrot.lane.b32.xlu0 %v246_v14, %s1875_s26  ;;  %v608_v0 = vmul.f32 %v606_v61, %v1937_v2  ;;  %v609_v3 = vmul.f32 %v606_v61, %v1994_v46  ;;  %v575_v4 = vsel %vm434_vm1, %v572_v58, %v574_v59  ;;  %v593_v5 = vrot.slane %v587_v57, 1  ;;  %s2162_s17 = sld [smem:[#allocation2 + $0x200]]  ;;  %p1796_p2 = scmp.eq.s32.totalorder %s1901_s10, 1 }
  0x3f   : > { %v595_v6 = vrot.slane %v588_v60, 1  ;;  %v573_v8 = vsel %vm434_vm1, %v571_v62, %v572_v58  ;;  %v592_v9 = vrot.slane %v586_v63, 1  ;;  %v607_v10 = vmul.f32 %v606_v61, %v1934_v1 }
  0x40   : > { %v614_v11 = vrot.slane %v608_v0, 1  ;;  %v616_v12 = vrot.slane %v609_v3, 1  ;;  %v629_v13 = vmul.f32 %v627_v7, %v1937_v2  ;;  %v630_v15 = vmul.f32 %v627_v7, %v1994_v46 }
  0x41   : > { %266 = vrot.lane.b32.xlu1 %v261_v16, %s1875_s26  ;;  %v596_v14 = vsel %vm434_vm1, %v593_v5, %v595_v6  ;;  %v594_v16 = vsel %vm434_vm1, %v592_v9, %v593_v5  ;;  %v628_v18 = vmul.f32 %v627_v7, %v1934_v1  ;;  %v711_v47 = vstv %s1736_s22  ;;  %s2190_s22 = sld [smem:[#allocation2 + $0x300]] }
  0x42   : > { %264 = vrot.lane.b32.xlu0 %v260_v17, %s1875_s26  ;;  %v613_v17 = vrot.slane %v607_v10, 1  ;;  %v635_v21 = vrot.slane %v629_v13, 1  ;;  %v713_v51 = vmul.f32 %v711_v47, %v1937_v2  ;;  %v714_v52 = vmul.f32 %v711_v47, %v1994_v46 }
  0x43   : > { %v634_v27 = vrot.slane %v628_v18, 1  ;;  %v732_v53 = vstv %s1737_s23  ;;  %v753_v3 = vstv %s1738_s24  ;;  %v774_v9 = vstv %s1739_s25  ;;  %s2194_s23 = sld [smem:[#allocation2 + $0x380]] }
  0x44   : > { %v734_v57 = vmul.f32 %v732_v53, %v1937_v2  ;;  %v735_v58 = vmul.f32 %v732_v53, %v1994_v46  ;;  %v719_v60 = vrot.slane %v713_v51, 1  ;;  %v721_v61 = vrot.slane %v714_v52, 1  ;;  %s2226_s24 = sld [smem:[#allocation2 + $0x8]] }
  0x45   : > { %280 = vrot.lane.b32.xlu1 %v275_v19, %s1875_s26  ;;  %v648_v19 = vstv %s1733_s18  ;;  %v733_v0 = vmul.f32 %v732_v53, %v1934_v1  ;;  %v755_v7 = vmul.f32 %v753_v3, %v1937_v2  ;;  %v776_v13 = vmul.f32 %v774_v9, %v1937_v2  ;;  %s2164_s18 = sld [smem:[#allocation2 + $0x307]]  ;;  %s2230_s25 = sld [smem:[#allocation2 + $0x88]] }
  0x46   : > { %278 = vrot.lane.b32.xlu0 %v274_v20, %s1875_s26  ;;  %v617_v20 = vsel %vm434_vm1, %v614_v11, %v616_v12  ;;  %v651_v24 = vmul.f32 %v648_v19, %v1994_v46  ;;  %v742_v5 = vrot.slane %v735_v58, 1  ;;  %v722_v6 = vsel %vm434_vm1, %v719_v60, %v721_v61 }
  0x47   : > { %v754_v12 = vmul.f32 %v753_v3, %v1934_v1 }
  0x48   : > { %v658_v33 = vrot.slane %v651_v24, 1 }
  0x49   : > { %294 = vrot.lane.b32.xlu1 %v289_v22, %s1875_s26  ;;  %v637_v22 = vrot.slane %v630_v15, 1 }
  0x4a   : > { %292 = vrot.lane.b32.xlu0 %v288_v23, %s1875_s26  ;;  %v650_v23 = vmul.f32 %v648_v19, %v1937_v2 }
  0x4d   : > { %308 = vrot.lane.b32.xlu1 %v303_v25, %s1875_s26  ;;  %v669_v25 = vstv %s1734_s19  ;;  %s2170_s19 = sld [smem:[#allocation2 + $0x387]] }
  0x4e   : > { %306 = vrot.lane.b32.xlu0 %v302_v26, %s1875_s26  ;;  %v615_v26 = vsel %vm434_vm1, %v613_v17, %v614_v11  ;;  %v672_v30 = vmul.f32 %v669_v25, %v1994_v46  ;;  %v739_v11 = vrot.slane %v733_v0, 1 }
  0x50   : > { %v679_v39 = vrot.slane %v672_v30, 1 }
  0x51   : > { %322 = vrot.lane.b32.xlu1 %v317_v28, %s1876_s7  ;;  %v649_v28 = vmul.f32 %v648_v19, %v1934_v1  ;;  %v760_v19 = vrot.slane %v754_v12, 1 }
  0x52   : > { %320 = vrot.lane.b32.xlu0 %v316_v29, %s1876_s7  ;;  %v671_v29 = vmul.f32 %v669_v25, %v1937_v2 }
  0x53   : > { %v655_v36 = vrot.slane %v649_v28, 1 }
  0x55   : > { %336 = vrot.lane.b32.xlu1 %v331_v31, %s1876_s7  ;;  %v638_v31 = vsel %vm434_vm1, %v635_v21, %v637_v22  ;;  %v782_v22 = vrot.slane %v776_v13, 1 }
  0x56   : > { %334 = vrot.lane.b32.xlu0 %v330_v32, %s1876_s7  ;;  %v656_v32 = vrot.slane %v650_v23, 1 }
  0x59   : > { %350 = vrot.lane.b32.xlu1 %v345_v34, %s1876_s7  ;;  %v690_v34 = vstv %s1735_s20  ;;  %s2188_s20 = sld [smem:[#allocation2 + $0x280]] }
  0x5a   : > { %348 = vrot.lane.b32.xlu0 %v344_v35, %s1876_s7  ;;  %v636_v35 = vsel %vm434_vm1, %v634_v27, %v635_v21  ;;  %v693_v42 = vmul.f32 %v690_v34, %v1994_v46  ;;  %v691_v45 = vmul.f32 %v690_v34, %v1934_v1  ;;  %v795_v21 = vstv %s1740_s27  ;;  %s2250_s27 = sld [smem:[#allocation2 + $0x108]] }
  0x5b   : > { %v816_v27 = vstv %s1741_s28  ;;  %v796_v30 = vmul.f32 %v795_v21, %v1934_v1  ;;  %s2262_s28 = sld [smem:[#allocation2 + $0x188]] }
  0x5d   : > { %364 = vrot.lane.b32.xlu1 %v359_v37, %s1876_s7  ;;  %v670_v37 = vmul.f32 %v669_v25, %v1934_v1  ;;  %v797_v25 = vmul.f32 %v795_v21, %v1937_v2 }
  0x5e   : > { %362 = vrot.lane.b32.xlu0 %v358_v38, %s1876_s7  ;;  %v677_v38 = vrot.slane %v671_v29, 1 }
  0x61   : > { %378 = vrot.lane.b32.xlu1 %v373_v40, %s1876_s7  ;;  %v692_v40 = vmul.f32 %v690_v34, %v1937_v2  ;;  %v803_v34 = vrot.slane %v797_v25, 1 }
  0x62   : > { %376 = vrot.lane.b32.xlu0 %v372_v41, %s1876_s7  ;;  %v659_v41 = vsel %vm434_vm1, %v656_v32, %v658_v33 }
  0x63   : > { %v698_v49 = vrot.slane %v692_v40, 1 }
  0x65   : > { %392 = vrot.lane.b32.xlu1 %v387_v43, %s1876_s7  ;;  %v657_v43 = vsel %vm434_vm1, %v655_v36, %v656_v32  ;;  %v819_v32 = vmul.f32 %v816_v27, %v1994_v46  ;;  %v837_v36 = vstv %s1742_s29  ;;  %s2299_s29 = sld [smem:[#allocation2 + $0x208]] }
  0x66   : > { %390 = vrot.lane.b32.xlu0 %v386_v44, %s1876_s7  ;;  %v676_v44 = vrot.slane %v670_v37, 1 }
  0x68   : > { %v678_v54 = vsel %vm434_vm1, %v676_v44, %v677_v38  ;;  %v840_v44 = vmul.f32 %v837_v36, %v1994_v46 }
  0x69   : > { %406 = vrot.lane.b32.xlu1 %v401_v48, %s1876_s7  ;;  %v680_v48 = vsel %vm434_vm1, %v677_v38, %v679_v39  ;;  %v802_v38 = vrot.slane %v796_v30, 1  ;;  %v817_v39 = vmul.f32 %v816_v27, %v1934_v1 }
  0x6a   : > { %404 = vrot.lane.b32.xlu0 %v400_v50, %s1876_s7  ;;  %v700_v50 = vrot.slane %v693_v42, 1  ;;  %v839_v42 = vmul.f32 %v837_v36, %v1937_v2  ;;  %v847_v52 = vrot.slane %v840_v44, 1 }
  0x6c   : > { %v701_v59 = vsel %vm434_vm1, %v698_v49, %v700_v50  ;;  %v845_v51 = vrot.slane %v839_v42, 1 }
  0x6d   : > { %420 = vrot.lane.b32.xlu1 %v415_v55, %s1876_s7  ;;  %v697_v55 = vrot.slane %v691_v45, 1  ;;  %v804_v45 = vsel %vm434_vm1, %v802_v38, %v803_v34 }
  0x6e   : > { %418 = vrot.lane.b32.xlu0 %v414_v56, %s1876_s7  ;;  %v712_v56 = vmul.f32 %v711_v47, %v1934_v1  ;;  %v823_v47 = vrot.slane %v817_v39, 1  ;;  %v848_v61 = vsel %vm434_vm1, %v845_v51, %v847_v52 }
  0x6f   : > { %v699_v62 = vsel %vm434_vm1, %v697_v55, %v698_v49  ;;  %v858_v49 = vstv %s1743_s30  ;;  %v879_v55 = vstv %s1744_s3  ;;  %s2318_s30 = sld [smem:[#allocation2 + $0x3]]  ;;  %s2327_s3 = sld [smem:[#allocation2 + $0x288]] }
  0x70   : > { %v718_v63 = vrot.slane %v712_v56, 1  ;;  %v860_v53 = vmul.f32 %v858_v49, %v1937_v2  ;;  %v859_v58 = vmul.f32 %v858_v49, %v1934_v1 }
  0x71   : > { %578 = vrot.lane.b32.xlu1 %v575_v4, %s1875_s26  ;;  %v740_v4 = vrot.slane %v734_v57, 1 }
  0x72   : > { %576 = vrot.lane.b32.xlu0 %v573_v8, %s1875_s26  ;;  %v756_v8 = vmul.f32 %v753_v3, %v1994_v46  ;;  %v720_v10 = vsel %vm434_vm1, %v718_v63, %v719_v60  ;;  %v882_v60 = vmul.f32 %v879_v55, %v1994_v46 }
  0x73   : > { %v743_v15 = vsel %vm434_vm1, %v740_v4, %v742_v5  ;;  %v741_v18 = vsel %vm434_vm1, %v739_v11, %v740_v4  ;;  %v865_v4 = vrot.slane %v859_v58, 1  ;;  %v880_v5 = vmul.f32 %v879_v55, %v1934_v1 }
  0x74   : > { %v763_v17 = vrot.slane %v756_v8, 1 }
  0x75   : > { %599 = vrot.lane.b32.xlu1 %v596_v14, %s1875_s26  ;;  %v777_v14 = vmul.f32 %v774_v9, %v1994_v46 }
  0x76   : > { %597 = vrot.lane.b32.xlu0 %v594_v16, %s1875_s26  ;;  %v761_v16 = vrot.slane %v755_v7, 1 }
  0x77   : > { %v784_v23 = vrot.slane %v777_v14, 1 }
  0x78   : > { %v764_v24 = vsel %vm434_vm1, %v761_v16, %v763_v17  ;;  %v762_v28 = vsel %vm434_vm1, %v760_v19, %v761_v16  ;;  %v1058_v17 = vstv %s1754_s5  ;;  %s2395_s5 = sld [smem:[#allocation2 + $0x103]] }
  0x79   : > { %620 = vrot.lane.b32.xlu1 %v617_v20, %s1875_s26  ;;  %v775_v20 = vmul.f32 %v774_v9, %v1934_v1  ;;  %v785_v33 = vsel %vm434_vm1, %v782_v22, %v784_v23  ;;  %v889_v9 = vrot.slane %v882_v60, 1  ;;  %v1060_v23 = vmul.f32 %v1058_v17, %v1937_v2 }
  0x7a   : > { %618 = vrot.lane.b32.xlu0 %v615_v26, %s1875_s26  ;;  %v798_v26 = vmul.f32 %v795_v21, %v1994_v46 }
  0x7b   : > { %v781_v29 = vrot.slane %v775_v20, 1  ;;  %v1079_v20 = vstv %s1755_s6  ;;  %s2407_s6 = sld [smem:[#allocation2 + $0x183]] }
  0x7c   : > { %v1081_v30 = vmul.f32 %v1079_v20, %v1937_v2  ;;  %v1080_v39 = vmul.f32 %v1079_v20, %v1934_v1 }
  0x7d   : > { %641 = vrot.lane.b32.xlu1 %v638_v31, %s1875_s26  ;;  %v818_v31 = vmul.f32 %v816_v27, %v1937_v2  ;;  %v783_v37 = vsel %vm434_vm1, %v781_v29, %v782_v22 }
  0x7e   : > { %639 = vrot.lane.b32.xlu0 %v636_v35, %s1875_s26  ;;  %v805_v35 = vrot.slane %v798_v26, 1  ;;  %v1086_v52 = vrot.slane %v1080_v39, 2 }
  0x7f   : > { %v824_v40 = vrot.slane %v818_v31, 1  ;;  %v1082_v31 = vmul.f32 %v1079_v20, %v1994_v46 }
  0x81   : > { %662 = vrot.lane.b32.xlu1 %v659_v41, %s1875_s26  ;;  %v826_v41 = vrot.slane %v819_v32, 1  ;;  %v825_v56 = vsel %vm434_vm1, %v823_v47, %v824_v40  ;;  %v1089_v44 = vrot.slane %v1082_v31, 2 }
  0x82   : > { %660 = vrot.lane.b32.xlu0 %v657_v43, %s1875_s26  ;;  %v806_v43 = vsel %vm434_vm1, %v803_v34, %v805_v35  ;;  %v1100_v35 = vstv %s2117_s8  ;;  %s2412_s8 = sld [smem:[#allocation2 + $0x388]] }
  0x83   : > { %v827_v50 = vsel %vm434_vm1, %v824_v40, %v826_v41  ;;  %v161_v40 = vstv %s2123_s11  ;;  %v155_v41 = vstv %s2125_s12  ;;  %v1103_v47 = vmul.f32 %v1100_v35, %v1994_v46  ;;  %s2434_s11 = sld [smem:[#allocation2 + $0x203]] }
  0x84   : > { %s2460_s12 = sld [smem:[#allocation2 + $0x283]] }
  0x85   : > { %683 = vrot.lane.b32.xlu1 %v680_v48, %s1875_s26  ;;  %v838_v48 = vmul.f32 %v837_v36, %v1934_v1 }
  0x86   : > { %681 = vrot.lane.b32.xlu0 %v678_v54, %s1875_s26  ;;  %v861_v54 = vmul.f32 %v858_v49, %v1994_v46 }
  0x87   : > { %v844_v57 = vrot.slane %v838_v48, 1  ;;  %v1101_v48 = vmul.f32 %v1100_v35, %v1934_v1 }
  0x88   : > { %v868_v63 = vrot.slane %v861_v54, 1  ;;  %v2179_v54 = vmul.f32 %v161_v40, %v1934_v1 }
  0x89   : > { %704 = vrot.lane.b32.xlu1 %v701_v59, %s1875_s26  ;;  %v881_v59 = vmul.f32 %v879_v55, %v1937_v2  ;;  %v846_v3 = vsel %vm434_vm1, %v844_v57, %v845_v51  ;;  %v2182_v55 = vmul.f32 %v155_v41, %v1934_v1  ;;  %v173_v57 = vstv %s2144_s15  ;;  %s1747_s15 = sld [smem:[#allocation2 + $0x106]] }
  0x8a   : > { %702 = vrot.lane.b32.xlu0 %v699_v62, %s1875_s26  ;;  %v866_v62 = vrot.slane %v860_v53, 1  ;;  %v1121_v53 = vstv %s2138_s13  ;;  %s2472_s13 = sld [smem:[#allocation2 + $0x303]] }
  0x8b   : > { %v887_v8 = vrot.slane %v881_v59, 1 }
  0x8c   : > { %v867_v14 = vsel %vm434_vm1, %v865_v4, %v866_v62  ;;  %v1122_v4 = vmul.f32 %v1121_v53, %v1934_v1 }
  0x8d   : > { %725 = vrot.lane.b32.xlu1 %v722_v6, %s1875_s26  ;;  %v1037_v6 = vstv %s1753_s4  ;;  %v890_v19 = vsel %vm434_vm1, %v887_v8, %v889_v9  ;;  %s2335_s4 = sld [smem:[#allocation2 + $0x83]] }
  0x8e   : > { %723 = vrot.lane.b32.xlu0 %v720_v10, %s1875_s26  ;;  %v869_v10 = vsel %vm434_vm1, %v866_v62, %v868_v63  ;;  %v1039_v11 = vmul.f32 %v1037_v6, %v1937_v2  ;;  %v1040_v12 = vmul.f32 %v1037_v6, %v1994_v46  ;;  %v1038_v16 = vmul.f32 %v1037_v6, %v1934_v1 }
  0x8f   : > { %v1107_v62 = vrot.slane %v1101_v48, 2  ;;  %v1123_v63 = vmul.f32 %v1121_v53, %v1937_v2  ;;  %v2202_v6 = vmul.f32 %v161_v40, %v1937_v2  ;;  %v191_v40 = vstv %s2190_s22  ;;  %s2642_s22 = sld [smem:[#allocation2 + $0x9]] }
  0x90   : > { %v1045_v21 = vrot.slane %v1039_v11, 2  ;;  %v1047_v22 = vrot.slane %v1040_v12, 2  ;;  %v1044_v27 = vrot.slane %v1038_v16, 2 }
  0x91   : > { %746 = vrot.lane.b32.xlu1 %v743_v15, %s1876_s7  ;;  %v886_v15 = vrot.slane %v880_v5, 1  ;;  %v1142_v5 = vstv %s2152_s16  ;;  %s1748_s16 = sld [smem:[#allocation2 + $0x186]] }
  0x92   : > { %744 = vrot.lane.b32.xlu0 %v741_v18, %s1876_s7  ;;  %v1048_v32 = vsel %vm907_vm2, %v1045_v21, %v1047_v22  ;;  %v1144_v20 = vmul.f32 %v1142_v5, %v1937_v2  ;;  %v1184_v22 = vstv %s2170_s19  ;;  %s1751_s19 = sld [smem:[#allocation2 + $0x306]] }
  0x93   : > { %v888_v26 = vsel %vm434_vm1, %v886_v15, %v887_v8  ;;  %v157_v8 = vmul.f32 %v155_v41, %v1937_v2  ;;  %v179_v15 = vstv %s2162_s17  ;;  %v197_v41 = vstv %s2194_s23  ;;  %s1749_s17 = sld [smem:[#allocation2 + $0x206]]  ;;  %s2644_s23 = sld [smem:[#allocation2 + $0x89]] }
  0x94   : > { %v1186_v48 = vmul.f32 %v1184_v22, %v1937_v2 }
  0x95   : > { %767 = vrot.lane.b32.xlu1 %v764_v24, %s1876_s7  ;;  %v1061_v24 = vmul.f32 %v1058_v17, %v1994_v46 }
  0x96   : > { %765 = vrot.lane.b32.xlu0 %v762_v28, %s1876_s7  ;;  %v1059_v28 = vmul.f32 %v1058_v17, %v1934_v1  ;;  %v1163_v17 = vstv %s2164_s18  ;;  %s1750_s18 = sld [smem:[#allocation2 + $0x286]] }
  0x97   : > { %v1068_v34 = vrot.slane %v1061_v24, 2  ;;  %v1129_v24 = vrot.slane %v1123_v63, 2  ;;  %v1165_v31 = vmul.f32 %v1163_v17, %v1937_v2  ;;  %v1185_v63 = vmul.f32 %v1184_v22, %v1934_v1 }
  0x98   : > { %v1065_v38 = vrot.slane %v1059_v28, 2 }
  0x99   : > { %788 = vrot.lane.b32.xlu1 %v785_v33, %s1876_s7  ;;  %v1066_v33 = vrot.slane %v1060_v23, 2 }
  0x9a   : > { %786 = vrot.lane.b32.xlu0 %v783_v37, %s1876_s7  ;;  %v1046_v37 = vsel %vm907_vm2, %v1044_v27, %v1045_v21  ;;  %v1145_v21 = vmul.f32 %v1142_v5, %v1994_v46  ;;  %v1128_v27 = vrot.slane %v1122_v4, 2  ;;  %v2282_v4 = vmul.f32 %v197_v41, %v1937_v2 }
  0x9b   : > { %v1069_v49 = vsel %vm907_vm2, %v1066_v33, %v1068_v34  ;;  %v1067_v51 = vsel %vm907_vm2, %v1065_v38, %v1066_v33  ;;  %v1164_v33 = vmul.f32 %v1163_v17, %v1934_v1  ;;  %v2239_v34 = vmul.f32 %v173_v57, %v1934_v1 }
  0x9c   : > { %v185_v38 = vstv %s2188_s20  ;;  %s2602_s20 = sld [smem:[#allocation2 + $0x386]] }
  0x9d   : > { %809 = vrot.lane.b32.xlu1 %v806_v43, %s1876_s7  ;;  %v1087_v43 = vrot.slane %v1081_v30, 2  ;;  %v1143_v30 = vmul.f32 %v1142_v5, %v1934_v1 }
  0x9e   : > { %807 = vrot.lane.b32.xlu0 %v804_v45, %s1876_s7  ;;  %v1102_v45 = vmul.f32 %v1100_v35, %v1937_v2  ;;  %v2242_v35 = vmul.f32 %v179_v15, %v1937_v2 }
  0x9f   : > { %v1090_v59 = vsel %vm907_vm2, %v1087_v43, %v1089_v44  ;;  %v1088_v11 = vsel %vm907_vm2, %v1086_v52, %v1087_v43  ;;  %v1150_v43 = vrot.slane %v1144_v20, 2  ;;  %v1152_v44 = vrot.slane %v1145_v21, 2 }
  0xa0   : > { %v1108_v60 = vrot.slane %v1102_v45, 2  ;;  %v1149_v52 = vrot.slane %v1143_v30, 2  ;;  %v1226_v20 = vstv %s2230_s25  ;;  %s2651_s25 = sld [smem:[#allocation2 + $0x189]] }
  0xa1   : > { %830 = vrot.lane.b32.xlu1 %v827_v50, %s1876_s7  ;;  %v1153_v5 = vsel %vm907_vm2, %v1150_v43, %v1152_v44  ;;  %v1227_v44 = vmul.f32 %v1226_v20, %v1934_v1 }
  0xa2   : > { %828 = vrot.lane.b32.xlu0 %v825_v56, %s1876_s7  ;;  %v167_v56 = vstv %s2140_s14  ;;  %v1109_v23 = vsel %vm907_vm2, %v1107_v62, %v1108_v60  ;;  %s2487_s14 = sld [smem:[#allocation2 + $0x383]] }
  0xa3   : > { %v2106_v0 = vpop.permute.xlu1 %222  ;;  %v2206_v9 = vmul.f32 %v167_v56, %v1937_v2  ;;  %v2212_v12 = vmul.f32 %v167_v56, %v1934_v1 }
  0xa4   : > { %v2110_v7 = vpop.permute.xlu0 %208 }
  0xa5   : > { %851 = vrot.lane.b32.xlu1 %v848_v61, %s1876_s7  ;;  %v1110_v61 = vrot.slane %v1103_v47, 2  ;;  %v1130_v47 = vsel %vm907_vm2, %v1128_v27, %v1129_v24  ;;  %v214_v21 = vadd.f32 %v2110_v7, %v2182_v55 }
  0xa6   : > { %849 = vrot.lane.b32.xlu0 %v846_v3, %s1876_s7  ;;  %v1124_v3 = vmul.f32 %v1121_v53, %v1994_v46  ;;  %v1171_v53 = vrot.slane %v1165_v31, 2  ;;  %v1191_v31 = vrot.slane %v1185_v63, 2 }
  0xa7   : > { %v2119_v13 = vpop.permute.xlu1 %224 }
  0xa8   : > { %v2127_v18 = vpop.permute.xlu0 %210 }
  0xa9   : > { %872 = vrot.lane.b32.xlu1 %v869_v10, %s1876_s7 }
  0xaa   : > { %870 = vrot.lane.b32.xlu0 %v867_v14, %s1876_s7  ;;  %v2215_v14 = vmul.f32 %v173_v57, %v1937_v2  ;;  %v1170_v57 = vrot.slane %v1164_v33, 2  ;;  %v1228_v33 = vmul.f32 %v1226_v20, %v1937_v2 }
  0xab   : > { %v2134_v25 = vpop.permute.xlu1 %238 }
  0xac   : > { %v2142_v29 = vpop.permute.xlu0 %236 }
  0xad   : > { %893 = vrot.lane.b32.xlu1 %v890_v19, %s1876_s7  ;;  %v1111_v19 = vsel %vm907_vm2, %v1108_v60, %v1110_v61  ;;  %v2268_v60 = vmul.f32 %v185_v38, %v1934_v1  ;;  %v2271_v61 = vmul.f32 %v191_v40, %v1937_v2 }
  0xae   : > { %891 = vrot.lane.b32.xlu0 %v888_v26, %s1876_s7  ;;  %v1131_v26 = vrot.slane %v1124_v3, 2  ;;  %v2277_v3 = vmul.f32 %v191_v40, %v1934_v1 }
  0xaf   : > { %v2154_v36 = vpop.permute.xlu1 %252 }
  0xb0   : > { %v2160_v42 = vpop.permute.xlu0 %250  ;;  %v1132_v45 = vsel %vm907_vm2, %v1129_v24, %v1131_v26  ;;  %v1172_v26 = vsel %vm907_vm2, %v1170_v57, %v1171_v53 }
  0xb1   : > { %1051 = vrot.lane.b32.xlu1 %v1048_v32, %s1875_s26  ;;  %v1166_v32 = vmul.f32 %v1163_v17, %v1994_v46  ;;  %v1192_v17 = vrot.slane %v1186_v48, 2 }
  0xb2   : > { %1049 = vrot.lane.b32.xlu0 %v1046_v37, %s1875_s26  ;;  %v2245_v37 = vmul.f32 %v179_v15, %v1934_v1  ;;  %v215_v15 = vadd.f32 %v2127_v18, %v157_v8  ;;  %v1247_v8 = vstv %s2250_s27  ;;  %s2655_s27 = sld [smem:[#allocation2 + $0x209]] }
  0xb3   : > { %v2174_v50 = vpop.permute.xlu1 %266  ;;  %v1173_v56 = vrot.slane %v1166_v32, 2  ;;  %v1249_v48 = vmul.f32 %v1247_v8, %v1937_v2  ;;  %v1248_v57 = vmul.f32 %v1247_v8, %v1934_v1 }
  0xb4   : > { %v2186_v58 = vpop.permute.xlu0 %264 }
  0xb5   : > { %1072 = vrot.lane.b32.xlu1 %v1069_v49, %s1875_s26  ;;  %v1187_v49 = vmul.f32 %v1184_v22, %v1994_v46  ;;  %v1174_v24 = vsel %vm907_vm2, %v1171_v53, %v1173_v56  ;;  %v1193_v53 = vsel %vm907_vm2, %v1191_v31, %v1192_v17  ;;  %v1289_v31 = vstv %s2299_s29  ;;  %s2663_s29 = sld [smem:[#allocation2 + $0x309]] }
  0xb6   : > { %1070 = vrot.lane.b32.xlu0 %v1067_v51, %s1875_s26 }
  0xb7   : > { %v2208_v10 = vpop.permute.xlu1 %280 }
  0xb8   : > { %v2218_v16 = vpop.permute.xlu0 %278 }
  0xb9   : > { %1093 = vrot.lane.b32.xlu1 %v1090_v59, %s1875_s26  ;;  %v2265_v59 = vmul.f32 %v185_v38, %v1937_v2  ;;  %v229_v38 = vadd.f32 %v2119_v13, %v2202_v6 }
  0xba   : > { %1091 = vrot.lane.b32.xlu0 %v1088_v11, %s1875_s26  ;;  %v1205_v11 = vstv %s2226_s24  ;;  %s2649_s24 = sld [smem:[#allocation2 + $0x109]] }
  0xbb   : > { %v2232_v28 = vpop.permute.xlu1 %294  ;;  %v1207_v18 = vmul.f32 %v1205_v11, %v1937_v2  ;;  %v1208_v7 = vmul.f32 %v1205_v11, %v1994_v46  ;;  %v1206_v55 = vmul.f32 %v1205_v11, %v1934_v1  ;;  %v243_v11 = vadd.f32 %v2134_v25, %v2206_v9 }
  0xbc   : > { %v2248_v39 = vpop.permute.xlu0 %292  ;;  %v1254_v9 = vrot.slane %v1248_v57, 2 }
  0xbd   : > { %1114 = vrot.lane.b32.xlu1 %v1111_v19, %s1875_s26  ;;  %v1194_v19 = vrot.slane %v1187_v49, 2  ;;  %v1250_v49 = vmul.f32 %v1247_v8, %v1994_v46  ;;  %v1213_v56 = vrot.slane %v1207_v18, 2  ;;  %v2347_v18 = vmul.f32 %v197_v41, %v1934_v1 }
  0xbe   : > { %1112 = vrot.lane.b32.xlu0 %v1109_v23, %s1875_s26  ;;  %v1151_v23 = vsel %vm907_vm2, %v1149_v52, %v1150_v43  ;;  %v1229_v43 = vmul.f32 %v1226_v20, %v1994_v46  ;;  %v1268_v52 = vstv %s2262_s28  ;;  %v242_v20 = vadd.f32 %v2142_v29, %v2212_v12  ;;  %s2657_s28 = sld [smem:[#allocation2 + $0x289]] }
  0xbf   : > { %v2260_v51 = vpop.permute.xlu1 %308  ;;  %v1195_v40 = vsel %vm907_vm2, %v1192_v17, %v1194_v19  ;;  %v1233_v17 = vrot.slane %v1227_v44, 2  ;;  %v2333_v19 = vmul.f32 %v1268_v52, %v1937_v2  ;;  %v2363_v44 = vmul.f32 %v1289_v31, %v1937_v2 }
  0xc0   : > { %v2273_v62 = vpop.permute.xlu0 %306  ;;  %v1290_v2 = vmul.f32 %v1289_v31, %v1934_v1 }
  0xc1   : > { %1135 = vrot.lane.b32.xlu1 %v1132_v45, %s1875_s26  ;;  %v228_v45 = vadd.f32 %v2106_v0, %v2179_v54  ;;  %v1215_v0 = vrot.slane %v1208_v7, 2  ;;  %v1212_v54 = vrot.slane %v1206_v55, 2  ;;  %v257_v7 = vadd.f32 %v2154_v36, %v2215_v14 }
  0xc2   : > { %1133 = vrot.lane.b32.xlu0 %v1130_v47, %s1875_s26  ;;  %v1276_v41 = vrot.slane %v2333_v19, 2 }
  0xc3   : > { %v323_v22 = vpop.permute.xlu1 %322  ;;  %v1216_v29 = vsel %vm907_vm2, %v1213_v56, %v1215_v0  ;;  %v1214_v12 = vsel %vm907_vm2, %v1212_v54, %v1213_v56  ;;  %v445_v0 = vstv %s2335_s4  ;;  %v270_v54 = vadd.f32 %v2186_v58, %v2245_v37 }
  0xc4   : > { %v2295_v27 = vadd.f32 %v323_v22, %v215_v15  ;;  %v321_v30 = vpop.permute.xlu0 %320  ;;  %v1236_v15 = vrot.slane %v1229_v43, 2  ;;  %v1255_v22 = vrot.slane %v1249_v48, 2 }
  0xc5   : > { %v2301_v32 = vadd.f32 %v321_v30, %v214_v21  ;;  %1156 = vrot.lane.b32.xlu1 %v1153_v5, %s1875_s26  ;;  %v1234_v5 = vrot.slane %v1228_v33, 2 }
  0xc6   : > { %1154 = vrot.lane.b32.xlu0 %v1151_v23, %s1875_s26  ;;  %v1257_v23 = vrot.slane %v1250_v49, 2  ;;  %v1256_v48 = vsel %vm907_vm2, %v1254_v9, %v1255_v22 }
  0xc7   : > { %v337_v47 = vpop.permute.xlu1 %336  ;;  %v1237_v55 = vsel %vm907_vm2, %v1234_v5, %v1236_v15  ;;  %v1235_v33 = vsel %vm907_vm2, %v1233_v17, %v1234_v5  ;;  %v2392_v15 = vld [vmem:[%s1929_s21] sm:$0xff] }
  0xc8   : > { %v2320_v13 = vadd.f32 %v337_v47, %v229_v38  ;;  %v335_v6 = vpop.permute.xlu0 %334  ;;  %v256_v38 = vadd.f32 %v2160_v42, %v2239_v34  ;;  %v1258_v47 = vsel %vm907_vm2, %v1255_v22, %v1257_v23  ;;  %v1292_v42 = vmul.f32 %v1289_v31, %v1994_v46 }
  0xc9   : > { %v2324_v63 = vadd.f32 %v335_v6, %v228_v45  ;;  %1177 = vrot.lane.b32.xlu1 %v1174_v24, %s1875_s26  ;;  %v1271_v24 = vmul.f32 %v1268_v52, %v1994_v46  ;;  %v427_v45 = vstv %s2318_s30  ;;  %v1310_v34 = vstv %s2327_s3  ;;  %s2665_s30 = sld [smem:[#allocation2 + $0x389]]  ;;  %s1877_s3 = smov [#allocation5]  }
  0xca   : > { %1175 = vrot.lane.b32.xlu0 %v1172_v26, %s1875_s26  ;;  %v1269_v26 = vmul.f32 %v1268_v52, %v1934_v1  ;;  %v271_v6 = vadd.f32 %v2174_v50, %v2242_v35  ;;  %v430_v57 = vmul.f32 %v427_v45, %v1994_v46  ;;  %v428_v50 = vmul.f32 %v2392_v15, %v427_v45  ;;  %s1636_s4 = sshll.u32 %s1877_s3, 4  ;;  %s1637_s4 = int_to_ptr.vmem [resolvable:$true] %s1636_s4 }
  0xcb   : > { %v351_v21 = vpop.permute.xlu1 %350  ;;  %v1278_v43 = vrot.slane %v1271_v24, 2  ;;  %v1311_v58 = vmul.f32 %v2392_v15, %v1310_v34  ;;  %v448_v23 = vmul.f32 %v445_v0, %v1994_v46  ;;  %v285_v24 = vadd.f32 %v2208_v10, %v2265_v59  ;;  %p1838_p6 = scmp.lt.s32.totalorder %s1637_s4, %s1637_s4 }
  0xcc   : > { %v2340_v30 = vadd.f32 %v351_v21, %v243_v11  ;;  %v349_v25 = vpop.permute.xlu0 %348  ;;  %v1275_v49 = vrot.slane %v1269_v26, 2  ;;  %v1297_v11 = vrot.slane %v2363_v44, 2  ;;  %v1299_v21 = vrot.slane %v1292_v42, 2 }
  0xcd   : > { %v2349_v8 = vadd.f32 %v349_v25, %v242_v20  ;;  %1198 = vrot.lane.b32.xlu1 %v1195_v40, %s1875_s26  ;;  %v1279_v1 = vsel %vm907_vm2, %v1276_v41, %v1278_v43  ;;  %v1313_v20 = vmul.f32 %v1310_v34, %v1994_v46  ;;  %v1296_v25 = vrot.slane %v1290_v2, 2 }
  0xce   : > { %1196 = vrot.lane.b32.xlu0 %v1193_v53, %s1875_s26  ;;  %s2376_s26 = sld [smem:[#allocation2 + $0x308]]  ;;  %v2382_v53 = vld [vmem:[%s1929_s21 + $0x8] sm:$0xff]  ;;  %v438_v26 = vrot.slane %v430_v57, 1  ;;  %v284_v31 = vadd.f32 %v2218_v16, %v2268_v60  ;;  %v299_v60 = vadd.f32 %v2232_v28, %v2271_v61  ;;  %v298_v42 = vadd.f32 %v2248_v39, %v2277_v3 }
  0xcf   : > { %v365_v40 = vpop.permute.xlu1 %364  ;;  %v429_v56 = vmul.f32 %v2382_v53, %v427_v45  ;;  %v1312_v19 = vmul.f32 %v2382_v53, %v1310_v34  ;;  %v447_v22 = vmul.f32 %v2382_v53, %v445_v0  ;;  %v455_v45 = vrot.slane %v448_v23, 1 }
  0xd0   : > { %v2366_v36 = vadd.f32 %v365_v40, %v257_v7  ;;  %v363_v14 = vpop.permute.xlu0 %362  ;;  %v435_v7 = vrot.slane %v428_v50, 1  ;;  %v1317_v40 = vrot.slane %v1311_v58, 2  ;;  %v1352_v50 = vstv %s2412_s8 }
  0xd1   : > { %v2370_v52 = vadd.f32 %v363_v14, %v256_v38  ;;  %1219 = vrot.lane.b32.xlu1 %v1216_v29, %s1876_s7  ;;  %v436_v9 = vrot.slane %v429_v56, 1  ;;  %v1318_v59 = vrot.slane %v1312_v19, 2  ;;  %v453_v44 = vrot.slane %v447_v22, 1 }
  0xd2   : > { %1217 = vrot.lane.b32.xlu0 %v1214_v12, %s1876_s7  ;;  %v1277_v12 = vsel %vm907_vm2, %v1275_v49, %v1276_v41  ;;  %v1300_v41 = vsel %vm907_vm2, %v1297_v11, %v1299_v21  ;;  %v1298_v14 = vsel %vm907_vm2, %v1296_v25, %v1297_v11  ;;  %v312_v19 = vadd.f32 %v2273_v62, %v2347_v18 }
  0xd3   : > { %v379_v5 = vpop.permute.xlu1 %378  ;;  %v439_v49 = vsel %vm434_vm1, %v436_v9, %v438_v26  ;;  %v1319_v3 = vsel %vm907_vm2, %v1317_v40, %v1318_v59  ;;  %v1354_v62 = vmul.f32 %v2382_v53, %v1352_v50  ;;  %v1355_v18 = vmul.f32 %v1352_v50, %v1994_v46 }
  0xd4   : > { %v2397_v35 = vadd.f32 %v379_v5, %v271_v6  ;;  %v377_v17 = vpop.permute.xlu0 %376  ;;  %v1331_v16 = vstv %s2376_s26  ;;  %v462_v6 = vstv %s2395_s5  ;;  %v313_v5 = vadd.f32 %v2260_v51, %v2282_v4  ;;  %s1831_s26 = scalar_lea.vmem %s1637_s4, 256 }
  0xd5   : > { %v2402_v37 = vadd.f32 %v377_v17, %v270_v54  ;;  %1240 = vrot.lane.b32.xlu1 %v1237_v55, %s1876_s7  ;;  %v446_v55 = vmul.f32 %v2392_v15, %v445_v0  ;;  %v1334_v56 = vmul.f32 %v1331_v16, %v1994_v46  ;;  %v1332_v57 = vmul.f32 %v2392_v15, %v1331_v16  ;;  %p1832_p3 = scmp.ne.s32.totalorder %s1637_s4, %s1831_s26  ;;  %p1839_p7 = scmp.lt.s32.totalorder %s1831_s26, %s1831_s26 }
  0xd6   : > { %1238 = vrot.lane.b32.xlu0 %v1235_v33, %s1876_s7  ;;  %v1320_v33 = vrot.slane %v1313_v20, 2  ;;  %v456_v54 = vsel %vm434_vm1, %v453_v44, %v455_v45  ;;  %v464_v11 = vmul.f32 %v2382_v53, %v462_v6  ;;  %v479_v17 = vstv %s2407_s6 }
  0xd7   : > { %v393_v29 = vpop.permute.xlu1 %392  ;;  %v452_v34 = vrot.slane %v446_v55, 1  ;;  %v465_v58 = vmul.f32 %v462_v6, %v1994_v46  ;;  %v463_v21 = vmul.f32 %v2392_v15, %v462_v6  ;;  %v1341_v4 = vrot.slane %v1334_v56, 2  ;;  %p1833_p4 = pnand %p1832_p3, %p1796_p2  ;;  %p1840_p8 = por %p1839_p7, %p1838_p6 }
  0xd8   : > { %v2418_v38 = vadd.f32 %v393_v29, %v285_v24  ;;  %v391_v10 = vpop.permute.xlu0 %390  ;;  %v1321_v39 = vsel %vm907_vm2, %v1318_v59, %v1320_v33  ;;  %v1338_v24 = vrot.slane %v1332_v57, 2  ;;  %v443_v26 = vadd.f32 %v439_v49, %v2295_v27 }
  0xd9   : > { %v2420_v43 = vadd.f32 %v391_v10, %v284_v31  ;;  %1261 = vrot.lane.b32.xlu1 %v1258_v47, %s1876_s7  ;;  %v437_v47 = vsel %vm434_vm1, %v435_v7, %v436_v9  ;;  %v1353_v9 = vmul.f32 %v2392_v15, %v1352_v50  ;;  %v470_v31 = vrot.slane %v464_v11, 1  ;;  %p1834_p5 = pneg %p1833_p4 }
  0xda   : > { %1259 = vrot.lane.b32.xlu0 %v1256_v48, %s1876_s7  ;;  %v1333_v48 = vmul.f32 %v2382_v53, %v1331_v16  ;;  %v481_v29 = vmul.f32 %v2382_v53, %v479_v17  ;;  %v442_v55 = vadd.f32 %v437_v47, %v2301_v32  ;;  %v472_v10 = vrot.slane %v465_v58, 1 }
  0xdb   : > { %v407_v2 = vpop.permute.xlu1 %406  ;;  %v469_v59 = vrot.slane %v463_v21, 1  ;;  %v496_v33 = vstv %s2434_s11  ;;  %v480_v16 = vmul.f32 %v2392_v15, %v479_v17  ;;  %v1359_v32 = vrot.slane %v1353_v9, 2  ;;  %p1841_p9 = pnand %p1840_p8, %p1834_p5 }
  0xdc   : > { %v2436_v28 = vadd.f32 %v407_v2, %v299_v60  ;;  %v405_v61 = vpop.permute.xlu0 %404  ;;  %v1339_v51 = vrot.slane %v1333_v48, 2  ;;  %v487_v49 = vrot.slane %v481_v29, 1  ;;  %v498_v2 = vmul.f32 %v2382_v53, %v496_v33  ;;  %v2493_v48 = vld [vmem:[%s1929_s21 + $0x10] sm:$0x3]  ;;  %s1745_s21 = sld [smem:[#allocation2 + $0x6]] }
  0xdd   : > { %v2441_v0 = vadd.f32 %v405_v61, %v298_v42  ;;  %1282 = vrot.lane.b32.xlu1 %v1279_v1, %s1876_s7  ;;  %v454_v1 = vsel %vm434_vm1, %v452_v34, %v453_v44  ;;  %v473_v6 = vsel %vm434_vm1, %v470_v31, %v472_v10  ;;  %v471_v61 = vsel %vm434_vm1, %v469_v59, %v470_v31 }
  0xde   : > { %1280 = vrot.lane.b32.xlu0 %v1277_v12, %s1876_s7  ;;  %v482_v12 = vmul.f32 %v479_v17, %v1994_v46  ;;  %v1342_v45 = vsel %vm907_vm2, %v1339_v51, %v1341_v4  ;;  %v1340_v27 = vsel %vm907_vm2, %v1338_v24, %v1339_v51  ;;  %v1360_v46 = vrot.slane %v1354_v62, 2 }
  0xdf   : > { %v421_v20 = vpop.permute.xlu1 %420  ;;  %v459_v34 = vadd.f32 %v454_v1, %v2324_v63  ;;  %v499_v56 = vmul.f32 %v2493_v48, %v496_v33  ;;  %v477_v50 = vadd.f32 %v473_v6, %v2340_v30  ;;  %v476_v58 = vadd.f32 %v471_v61, %v2349_v8 }
  0xe0   : > { %v2458_v22 = vadd.f32 %v421_v20, %v313_v5  ;;  %v419_v23 = vpop.permute.xlu0 %418  ;;  %v489_v42 = vrot.slane %v482_v12, 1  ;;  %v1361_v11 = vsel %vm907_vm2, %v1359_v32, %v1360_v46  ;;  %v530_v20 = vstv %s2472_s13 }
  0xe1   : > { %v2462_v25 = vadd.f32 %v419_v23, %v312_v19  ;;  %1303 = vrot.lane.b32.xlu1 %v1300_v41, %s1876_s7  ;;  %v1362_v41 = vrot.slane %v1355_v18, 2  ;;  %v504_v19 = vrot.slane %v498_v2, 1  ;;  %v506_v21 = vrot.slane %v499_v56, 1 }
  0xe2   : > { %1301 = vrot.lane.b32.xlu0 %v1298_v14, %s1876_s7  ;;  %v460_v14 = vadd.f32 %v456_v54, %v2320_v13  ;;  %v513_v54 = vstv %s2460_s12  ;;  %v490_v17 = vsel %vm434_vm1, %v487_v49, %v489_v42  ;;  %v533_v31 = vmul.f32 %v2493_v48, %v530_v20 }
  0xe3   : > { %v579_v7 = vpop.permute.xlu1 %578  ;;  %v1363_v63 = vsel %vm907_vm2, %v1360_v46, %v1362_v41  ;;  %v515_v23 = vmul.f32 %v2382_v53, %v513_v54  ;;  %v516_v51 = vmul.f32 %v2493_v48, %v513_v54  ;;  %v514_v30 = vmul.f32 %v2392_v15, %v513_v54 }
  0xe4   : > { %v2476_v40 = vadd.f32 %v579_v7, %v443_v26  ;;  %v577_v44 = vpop.permute.xlu0 %576  ;;  %v494_v8 = vadd.f32 %v490_v17, %v2366_v36  ;;  %v532_v26 = vmul.f32 %v2382_v53, %v530_v20  ;;  %v547_v29 = vstv %s2487_s14 }
  0xe5   : > { %v2481_v60 = vadd.f32 %v577_v44, %v442_v55  ;;  %1324 = vrot.lane.b32.xlu1 %v1321_v39, %s1876_s7  ;;  %v486_v39 = vrot.slane %v480_v16, 1  ;;  %v507_v55 = vsel %vm434_vm1, %v504_v19, %v506_v21  ;;  %v521_v10 = vrot.slane %v515_v23, 1 }
  0xe6   : > { %1322 = vrot.lane.b32.xlu0 %v1319_v3, %s1876_s7  ;;  %v497_v3 = vmul.f32 %v2392_v15, %v496_v33  ;;  %v523_v59 = vrot.slane %v516_v51, 1  ;;  %v531_v16 = vmul.f32 %v2392_v15, %v530_v20  ;;  %v511_v46 = vadd.f32 %v507_v55, %v2397_v35 }
  0xe7   : > { %v600_v47 = vpop.permute.xlu1 %599  ;;  %v488_v62 = vsel %vm434_vm1, %v486_v39, %v487_v49  ;;  %v538_v41 = vrot.slane %v532_v26, 1  ;;  %v540_v32 = vrot.slane %v533_v31, 1  ;;  %v549_v42 = vmul.f32 %v2382_v53, %v547_v29 }
  0xe8   : > { %v2496_v57 = vadd.f32 %v600_v47, %v460_v14  ;;  %v598_v13 = vpop.permute.xlu0 %597  ;;  %v503_v18 = vrot.slane %v497_v3, 1  ;;  %v493_v7 = vadd.f32 %v488_v62, %v2370_v52  ;;  %v524_v52 = vsel %vm434_vm1, %v521_v10, %v523_v59 }
  0xe9   : > { %v2500_v5 = vadd.f32 %v598_v13, %v459_v34  ;;  %1345 = vrot.lane.b32.xlu1 %v1342_v45, %s1876_s7  ;;  %v550_v2 = vmul.f32 %v2493_v48, %v547_v29  ;;  %v537_v61 = vrot.slane %v531_v16, 1  ;;  %v548_v56 = vmul.f32 %v2392_v15, %v547_v29 }
  0xea   : > { %1343 = vrot.lane.b32.xlu0 %v1340_v27, %s1876_s7  ;;  %v505_v45 = vsel %vm434_vm1, %v503_v18, %v504_v19  ;;  %v520_v27 = vrot.slane %v514_v30, 1  ;;  %v528_v35 = vadd.f32 %v524_v52, %v2418_v38  ;;  %v555_v54 = vrot.slane %v549_v42, 1 }
  0xeb   : > { %v621_v1 = vpop.permute.xlu1 %620  ;;  %v510_v49 = vadd.f32 %v505_v45, %v2402_v37  ;;  %v541_v37 = vsel %vm434_vm1, %v538_v41, %v540_v32  ;;  %v539_v17 = vsel %vm434_vm1, %v537_v61, %v538_v41  ;;  %v554_v19 = vrot.slane %v548_v56, 1 }
  0xec   : > { %v2512_v4 = vadd.f32 %v621_v1, %v477_v50  ;;  %v619_v24 = vpop.permute.xlu0 %618  ;;  %v522_v6 = vsel %vm434_vm1, %v520_v27, %v521_v10  ;;  %v545_v1 = vadd.f32 %v541_v37, %v2436_v28  ;;  %v544_v21 = vadd.f32 %v539_v17, %v2441_v0 }
  0xed   : > { %v2516_v9 = vadd.f32 %v619_v24, %v476_v58  ;;  %1366 = vrot.lane.b32.xlu1 %v1363_v63, %s1876_s7  ;;  %v527_v3 = vadd.f32 %v522_v6, %v2420_v43  ;;  %v557_v63 = vrot.slane %v550_v2, 1  ;;  %v556_v43 = vsel %vm434_vm1, %v554_v19, %v555_v54 }
  0xee   : > { %1364 = vrot.lane.b32.xlu0 %v1361_v11, %s1876_s7  ;;  %v561_v30 = vadd.f32 %v556_v43, %v2462_v25  ;;  %s1746_s7 = sld [smem:[#allocation2 + $0x86]]  ;;  %v900_v56 = vstv %s1745_s21  ;;  %v952_v19 = vstv %s1748_s16 }
  0xef   : > { %v642_v12 = vpop.permute.xlu1 %641  ;;  %v558_v38 = vsel %vm434_vm1, %v555_v54, %v557_v63  ;;  %v2589_v37 = vmul.f32 %v2493_v48, %v900_v56  ;;  %v935_v54 = vstv %s1747_s15  ;;  %v2592_v63 = vmul.f32 %v2392_v15, %v900_v56 }
  0xf0   : > { %v646_v33 = vadd.f32 %v642_v12, %v494_v8  ;;  %v640_v44 = vpop.permute.xlu0 %639  ;;  %v562_v62 = vadd.f32 %v558_v38, %v2458_v22  ;;  %v937_v38 = vmul.f32 %v2382_v53, %v935_v54  ;;  %v936_v43 = vmul.f32 %v2392_v15, %v935_v54 }
  0xf1   : > { %v645_v36 = vadd.f32 %v640_v44, %v493_v7 }
  0xf3   : > { %v663_v14 = vpop.permute.xlu1 %662 }
  0xf4   : > { %v667_v47 = vadd.f32 %v663_v14, %v511_v46  ;;  %v661_v34 = vpop.permute.xlu0 %660 }
  0xf5   : > { %v666_v13 = vadd.f32 %v661_v34, %v510_v49 }
  0xf7   : > { %v684_v39 = vpop.permute.xlu1 %683 }
  0xf8   : > { %v688_v11 = vadd.f32 %v684_v39, %v528_v35  ;;  %v682_v50 = vpop.permute.xlu0 %681  ;;  %v2584_v35 = vmul.f32 %v2382_v53, %v900_v56  ;;  %v918_v39 = vstv %s1746_s7  ;;  %v942_v56 = vrot.slane %v936_v43, 2 }
  0xf9   : > { %v687_v20 = vadd.f32 %v682_v50, %v527_v3  ;;  %v2598_v50 = vmul.f32 %v2493_v48, %v918_v39 }
  0xfb   : > { %v705_v58 = vpop.permute.xlu1 %704 }
  0xfc   : > { %v709_v23 = vadd.f32 %v705_v58, %v545_v1  ;;  %v703_v51 = vpop.permute.xlu0 %702  ;;  %v2606_v1 = vmul.f32 %v2392_v15, %v918_v39 }
  0xfd   : > { %v708_v24 = vadd.f32 %v703_v51, %v544_v21  ;;  %v911_v21 = vrot.slane %v2589_v37, 2  ;;  %v969_v51 = vstv %s1749_s17 }
  0xff   : > { %v726_v18 = vpop.permute.xlu1 %725 }
 0x100   : > { %v730_v8 = vadd.f32 %v726_v18, %v562_v62  ;;  %v724_v26 = vpop.permute.xlu0 %723  ;;  %v955_v62 = vmul.f32 %v2493_v48, %v952_v19  ;;  %v986_v18 = vstv %s1750_s18 }
 0x101   : > { %v729_v31 = vadd.f32 %v724_v26, %v561_v30  ;;  %v908_v30 = vrot.slane %v2592_v63, 2  ;;  %v928_v26 = vrot.slane %v2598_v50, 2  ;;  %v989_v37 = vmul.f32 %v2493_v48, %v986_v18 }
 0x103   : > { %v2545_v29 = vpop.permute.xlu1 %746 }
 0x104   : > { %v2547_v28 = vpop.permute.xlu0 %744 }
 0x107   : > { %v2549_v0 = vpop.permute.xlu1 %767 }
 0x108   : > { %v2551_v12 = vpop.permute.xlu0 %765 }
 0x10b   : > { %v2553_v7 = vpop.permute.xlu1 %788 }
 0x10c   : > { %v2555_v55 = vpop.permute.xlu0 %786 }
 0x10f   : > { %v810_v10 = vpop.permute.xlu1 %809 }
 0x110   : > { %v2557_v22 = vadd.f32 %v810_v10, %v646_v33  ;;  %v808_v59 = vpop.permute.xlu0 %807  ;;  %v953_v10 = vmul.f32 %v2392_v15, %v952_v19 }
 0x111   : > { %v2559_v25 = vadd.f32 %v808_v59, %v645_v36  ;;  %v925_v59 = vrot.slane %v2606_v1, 2 }
 0x113   : > { %v831_v44 = vpop.permute.xlu1 %830 }
 0x114   : > { %v2561_v45 = vadd.f32 %v831_v44, %v667_v47  ;;  %v829_v27 = vpop.permute.xlu0 %828 }
 0x115   : > { %v2563_v16 = vadd.f32 %v829_v27, %v666_v13  ;;  %v971_v27 = vmul.f32 %v2382_v53, %v969_v51 }
 0x117   : > { %v852_v46 = vpop.permute.xlu1 %851  ;;  %v977_v1 = vrot.slane %v971_v27, 2 }
 0x118   : > { %v2565_v41 = vadd.f32 %v852_v46, %v688_v11  ;;  %v850_v32 = vpop.permute.xlu0 %849  ;;  %v2595_v11 = vmul.f32 %v2382_v53, %v918_v39  ;;  %v972_v46 = vmul.f32 %v2493_v48, %v969_v51  ;;  %v962_v39 = vrot.slane %v955_v62, 2 }
 0x119   : > { %v2567_v14 = vadd.f32 %v850_v32, %v687_v20  ;;  %v909_v20 = vrot.slane %v2584_v35, 2  ;;  %v1003_v32 = vstv %s1751_s19 }
 0x11a   : > { %v1005_v50 = vmul.f32 %v2382_v53, %v1003_v32  ;;  %v1004_v43 = vmul.f32 %v2392_v15, %v1003_v32 }
 0x11b   : > { %v873_v49 = vpop.permute.xlu1 %872 }
 0x11c   : > { %v2569_v52 = vadd.f32 %v873_v49, %v709_v23  ;;  %v871_v33 = vpop.permute.xlu0 %870  ;;  %v938_v23 = vmul.f32 %v2493_v48, %v935_v54  ;;  %v943_v49 = vrot.slane %v937_v38, 2  ;;  %v959_v54 = vrot.slane %v953_v10, 2 }
 0x11d   : > { %v2571_v42 = vadd.f32 %v871_v33, %v708_v24  ;;  %v2615_v24 = vmul.f32 %v2382_v53, %v952_v19  ;;  %v1020_v19 = vstv %s2602_s20  ;;  %v979_v38 = vrot.slane %v972_v46, 2 }
 0x11e   : > { %v945_v33 = vrot.slane %v938_v23, 2  ;;  %v996_v10 = vrot.slane %v989_v37, 2  ;;  %v1021_v27 = vmul.f32 %v2392_v15, %v1020_v19 }
 0x11f   : > { %v894_v36 = vpop.permute.xlu1 %893  ;;  %v960_v35 = vrot.slane %v2615_v24, 2 }
 0x120   : > { %v2573_v2 = vadd.f32 %v894_v36, %v730_v8  ;;  %v892_v47 = vpop.permute.xlu0 %891  ;;  %v926_v8 = vrot.slane %v2595_v11, 2  ;;  %v970_v36 = vmul.f32 %v2392_v15, %v969_v51  ;;  %v987_v11 = vmul.f32 %v2392_v15, %v986_v18 }
 0x121   : > { %v2575_v34 = vadd.f32 %v892_v47, %v729_v31  ;;  %v988_v47 = vmul.f32 %v2382_v53, %v986_v18  ;;  %v1006_v51 = vmul.f32 %v2493_v48, %v1003_v32  ;;  %v1022_v18 = vmul.f32 %v2382_v53, %v1020_v19 }
 0x122   : > { %v976_v24 = vrot.slane %v970_v36, 2  ;;  %v993_v32 = vrot.slane %v987_v11, 2  ;;  %v1011_v36 = vrot.slane %v1005_v50, 2  ;;  %v910_v53 = vsel %vm907_vm2, %v908_v30, %v909_v20 }
 0x123   : > { %v2577_v6 = vpop.permute.xlu1 %1051  ;;  %v994_v62 = vrot.slane %v988_v47, 2  ;;  %v912_v47 = vsel %vm907_vm2, %v909_v20, %v911_v21  ;;  %v1010_v15 = vrot.slane %v1004_v43, 2  ;;  %v927_v11 = vsel %vm907_vm2, %v925_v59, %v926_v8 }
 0x124   : > { %v2579_v61 = vpop.permute.xlu0 %1049  ;;  %v946_v50 = vsel %vm907_vm2, %v943_v49, %v945_v33  ;;  %v963_v21 = vsel %vm907_vm2, %v960_v35, %v962_v39  ;;  %v1027_v30 = vrot.slane %v1021_v27, 2  ;;  %v980_v43 = vsel %vm907_vm2, %v977_v1, %v979_v38 }
 0x125   : > { %v995_v59 = vsel %vm907_vm2, %v993_v32, %v994_v62  ;;  %v1012_v33 = vsel %vm907_vm2, %v1010_v15, %v1011_v36  ;;  %v772_v39 = vadd.f32 %v2549_v0, %v2496_v57  ;;  %v1407_v38 = vstv %s2644_s23 }
 0x126   : > { %v1439_v57 = vstv %s2649_s24  ;;  %v1471_v0 = vstv %s2651_s25  ;;  %v984_v15 = vadd.f32 %v980_v43, %v2561_v45 }
 0x127   : > { %v2581_v13 = vpop.permute.xlu1 %1072 }
 0x128   : > { %v2586_v3 = vpop.permute.xlu0 %1070 }
 0x12b   : > { %v2600_v17 = vpop.permute.xlu1 %1093 }
 0x12c   : > { %v2608_v58 = vpop.permute.xlu0 %1091 }
 0x12f   : > { %v2621_v31 = vpop.permute.xlu1 %1114 }
 0x130   : > { %v2625_v44 = vpop.permute.xlu0 %1112 }
 0x131   : > { %2853 = vst [vmem:[#allocation8_spill] sm:$0xff] %v2625_v44 }
 0x133   : > { %v2633_v63 = vpop.permute.xlu1 %1135 }
 0x134   : > { %2854 = vst [vmem:[#allocation9_spill] sm:$0xff] %v2633_v63  ;;  %v2638_v23 = vpop.permute.xlu0 %1133  ;;  %v1023_v63 = vmul.f32 %v2493_v48, %v1020_v19  ;;  %v1013_v48 = vrot.slane %v1006_v51, 2  ;;  %v929_v19 = vsel %vm907_vm2, %v926_v8, %v928_v26  ;;  %v961_v51 = vsel %vm907_vm2, %v959_v54, %v960_v35 }
 0x135   : > { %2855 = vst [vmem:[#allocation10_spill] sm:$0xff] %v2638_v23  ;;  %v1028_v23 = vrot.slane %v1022_v18, 2  ;;  %v997_v26 = vsel %vm907_vm2, %v994_v62, %v996_v10  ;;  %v751_v8 = vadd.f32 %v2545_v29, %v2476_v40  ;;  %v750_v35 = vadd.f32 %v2547_v28, %v2481_v60 }
 0x136   : > { %v1030_v20 = vrot.slane %v1023_v63, 2  ;;  %v771_v40 = vadd.f32 %v2551_v12, %v2500_v5  ;;  %v793_v29 = vadd.f32 %v2553_v7, %v2512_v4  ;;  %v792_v54 = vadd.f32 %v2555_v55, %v2516_v9 }
 0x137   : > { %v2653_v46 = vpop.permute.xlu1 %1156  ;;  %v1373_v60 = vstv %s2642_s22  ;;  %v916_v62 = vadd.f32 %v912_v47, %v751_v8  ;;  %v1535_v12 = vstv %s2657_s28  ;;  %v1567_v10 = vstv %s2663_s29 }
 0x138   : > { %2856 = vst [vmem:[#allocation11_spill] sm:$0xff] %v2653_v46  ;;  %v2661_v37 = vpop.permute.xlu0 %1154  ;;  %v944_v46 = vsel %vm907_vm2, %v942_v56, %v943_v49  ;;  %v1014_v49 = vsel %vm907_vm2, %v1011_v36, %v1013_v48  ;;  %v1031_v63 = vsel %vm907_vm2, %v1028_v23, %v1030_v20  ;;  %v1599_v18 = vstv %s2665_s30 }
 0x139   : > { %2857 = vst [vmem:[#allocation12_spill] sm:$0xff] %v2661_v37  ;;  %v978_v37 = vsel %vm907_vm2, %v976_v24, %v977_v1  ;;  %v1029_v1 = vsel %vm907_vm2, %v1027_v30, %v1028_v23  ;;  %v1503_v24 = vstv %s2655_s27  ;;  %v915_v4 = vadd.f32 %v910_v53, %v750_v35 }
 0x13a   : > { %v933_v7 = vadd.f32 %v929_v19, %v772_v39  ;;  %v932_v27 = vadd.f32 %v927_v11, %v771_v40  ;;  %v950_v9 = vadd.f32 %v946_v50, %v793_v29  ;;  %v1056_v55 = vadd.f32 %v2577_v6, %v916_v62  ;;  %v2858_v50 = vld [vmem:[#allocation8_spill] sm:$0xff] }
 0x13b   : > { %v1178_v44 = vpop.permute.xlu1 %1177  ;;  %v949_v32 = vadd.f32 %v944_v46, %v792_v54  ;;  %v967_v23 = vadd.f32 %v963_v21, %v2557_v22  ;;  %v966_v36 = vadd.f32 %v961_v51, %v2559_v25  ;;  %v1055_v48 = vadd.f32 %v2579_v61, %v915_v4  ;;  %v2859_v21 = vld [vmem:[#allocation9_spill] sm:$0xff] }
 0x13c   : > { %v1176_v56 = vpop.permute.xlu0 %1175  ;;  %v983_v47 = vadd.f32 %v978_v37, %v2563_v16  ;;  %v1001_v20 = vadd.f32 %v997_v26, %v2565_v41  ;;  %v1000_v53 = vadd.f32 %v995_v59, %v2567_v14  ;;  %v1018_v19 = vadd.f32 %v1014_v49, %v2569_v52  ;;  %v2860_v43 = vld [vmem:[#allocation10_spill] sm:$0xff] }
 0x13d   : > { %v1017_v6 = vadd.f32 %v1012_v33, %v2571_v42  ;;  %v1077_v22 = vadd.f32 %v2581_v13, %v933_v7  ;;  %v1035_v25 = vadd.f32 %v1031_v63, %v2573_v2  ;;  %v1034_v61 = vadd.f32 %v1029_v1, %v2575_v34 }
 0x13e   : > { %v1076_v16 = vadd.f32 %v2586_v3, %v932_v27  ;;  %v1098_v41 = vadd.f32 %v2600_v17, %v950_v9  ;;  %v1097_v37 = vadd.f32 %v2608_v58, %v949_v32  ;;  %v1119_v52 = vadd.f32 %v2621_v31, %v967_v23 }
 0x13f   : > { %v1199_v28 = vpop.permute.xlu1 %1198  ;;  %v2719_v42 = vadd.f32 %v2858_v50, %v966_v36  ;;  %v2722_v51 = vadd.f32 %v2859_v21, %v984_v15  ;;  %v2725_v34 = vadd.f32 %v2860_v43, %v983_v47  ;;  %v2861_v26 = vld [vmem:[#allocation11_spill] sm:$0xff]  ;;  %v2733_v31 = vadd.f32 %v1178_v44, %v1018_v19 }
 0x140   : > { %v1197_v5 = vpop.permute.xlu0 %1196  ;;  %v2728_v3 = vadd.f32 %v2861_v26, %v1001_v20  ;;  %v2862_v59 = vld [vmem:[#allocation12_spill] sm:$0xff]  ;;  %v2735_v39 = vadd.f32 %v1176_v56, %v1017_v6  ;;  %v2738_v63 = vadd.f32 %v1199_v28, %v1035_v25 }
 0x141   : > { %v2731_v49 = vadd.f32 %v2862_v59, %v1000_v53 }
 0x143   : > { %v1220_v30 = vpop.permute.xlu1 %1219 }
 0x144   : > { %v1224_v46 = vadd.f32 %v1220_v30, %v1056_v55  ;;  %v1218_v11 = vpop.permute.xlu0 %1217  ;;  %v2742_v55 = vadd.f32 %v1197_v5, %v1034_v61 }
 0x145   : > { %v1223_v45 = vadd.f32 %v1218_v11, %v1055_v48 }
 0x146   : > { %v1375_v14 = vadd.f32 %v1373_v60, %v1224_v46 }
 0x147   : > { %v1374_v13 = vadd.f32 %v1373_v60, %v1223_v45  ;;  %v1241_v2 = vpop.permute.xlu1 %1240 }
 0x148   : > { %v1377_v17 = vmax.f32 %v1375_v14, 0.0  ;;  %v1245_v8 = vadd.f32 %v1241_v2, %v1077_v22  ;;  %v1239_v58 = vpop.permute.xlu0 %1238 }
 0x149   : > { %v1376_v33 = vmax.f32 %v1374_v13, 0.0  ;;  %v1244_v35 = vadd.f32 %v1239_v58, %v1076_v16 }
 0x14a   : > { %v1381_v40 = vsel %vm1379_vm3, %v1377_v17, 0.0  ;;  %v1394_v29 = vmul.f32 %v1377_v17, %v1377_v17  ;;  %v1409_v54 = vadd.f32 %v1407_v38, %v1245_v8 }
 0x14b   : > { %v1380_v1 = vsel %vm1379_vm3, %v1376_v33, 0.0  ;;  %v1393_v60 = vmul.f32 %v1376_v33, %v1376_v33  ;;  %v1408_v62 = vadd.f32 %v1407_v38, %v1244_v35  ;;  %v1262_v4 = vpop.permute.xlu1 %1261 }
 0x14c   : > { %v1396_v7 = vsel %vm1379_vm3, %v1394_v29, 0.0  ;;  %v1382_v44 = vadd.f32 %v1381_v40, %v1380_v1  ;;  %v1411_v27 = vmax.f32 %v1409_v54, 0.0  ;;  %v1266_v9 = vadd.f32 %v1262_v4, %v1098_v41  ;;  %v1260_v56 = vpop.permute.xlu0 %1259 }
 0x14d   : > { %v1395_v32 = vsel %vm1379_vm3, %v1393_v60, 0.0  ;;  %v1410_v23 = vmax.f32 %v1408_v62, 0.0  ;;  %v1265_v28 = vadd.f32 %v1260_v56, %v1097_v37  ;;  %v1378_v60 = vld [vmem:[#allocation5] sm:$0x1] }
 0x14e   : > { %v1383_v36 = vrot.slane %v1382_v44, 4  ;;  %v1397_v48 = vadd.f32 %v1396_v7, %v1395_v32  ;;  %v1414_v15 = vsel %vm1379_vm3, %v1411_v27, 0.0  ;;  %v1426_v38 = vmul.f32 %v1411_v27, %v1411_v27 }
 0x14f   : > { %v1413_v47 = vsel %vm1379_vm3, %v1410_v23, 0.0  ;;  %v1425_v20 = vmul.f32 %v1410_v23, %v1410_v23  ;;  %v1441_v30 = vadd.f32 %v1439_v57, %v1266_v9  ;;  %v1440_v53 = vadd.f32 %v1439_v57, %v1265_v28  ;;  %v1283_v19 = vpop.permute.xlu1 %1282  ;;  %v1392_v28 = vld [vmem:[#allocation5 + $0x8] sm:$0x1] }
 0x150   : > { %v1384_v6 = vadd.f32 %v1383_v36, %v1382_v44  ;;  %v1398_v5 = vrot.slane %v1397_v48, 4  ;;  %v1428_v46 = vsel %vm1379_vm3, %v1426_v38, 0.0  ;;  %v1415_v11 = vadd.f32 %v1414_v15, %v1413_v47  ;;  %v1281_v50 = vpop.permute.xlu0 %1280 }
 0x151   : > { %v1427_v22 = vsel %vm1379_vm3, %v1425_v20, 0.0  ;;  %v1443_v25 = vmax.f32 %v1441_v30, 0.0  ;;  %v1442_v61 = vmax.f32 %v1440_v53, 0.0  ;;  %v1287_v45 = vadd.f32 %v1283_v19, %v1119_v52  ;;  %v1412_v19 = vld [vmem:[#allocation5 + $0x1] sm:$0x1] }
 0x152   : > { %v1385_v16 = vrot.slane %v1384_v6, 2  ;;  %v1399_v41 = vadd.f32 %v1398_v5, %v1397_v48  ;;  %v1416_v37 = vrot.slane %v1415_v11, 4  ;;  %v1429_v14 = vadd.f32 %v1428_v46, %v1427_v22 }
 0x153   : > { %v1446_v57 = vsel %vm1379_vm3, %v1443_v25, 0.0  ;;  %v1458_v21 = vmul.f32 %v1443_v25, %v1443_v25  ;;  %v1445_v13 = vsel %vm1379_vm3, %v1442_v61, 0.0  ;;  %v1457_v2 = vmul.f32 %v1442_v61, %v1442_v61  ;;  %v1304_v35 = vpop.permute.xlu1 %1303 }
 0x154   : > { %v1386_v43 = vadd.f32 %v1385_v16, %v1384_v6  ;;  %v1400_v26 = vrot.slane %v1399_v41, 2  ;;  %v1417_v17 = vadd.f32 %v1416_v37, %v1415_v11  ;;  %v1430_v8 = vrot.slane %v1429_v14, 4  ;;  %v1302_v23 = vpop.permute.xlu0 %1301  ;;  %v1424_v16 = vld [vmem:[#allocation5 + $0x9] sm:$0x1] }
 0x155   : > { %v1460_v58 = vsel %vm1379_vm3, %v1458_v21, 0.0  ;;  %v1447_v59 = vadd.f32 %v1446_v57, %v1445_v13  ;;  %v1459_v52 = vsel %vm1379_vm3, %v1457_v2, 0.0  ;;  %v1473_v33 = vadd.f32 %v1471_v0, %v1287_v45 }
 0x156   : > { %v1387_v40 = vrot.slane %v1386_v43, 1  ;;  %v1401_v29 = vadd.f32 %v1400_v26, %v1399_v41  ;;  %v1418_v54 = vrot.slane %v1417_v17, 2  ;;  %v1431_v1 = vadd.f32 %v1430_v8, %v1429_v14 }
 0x157   : > { %v1448_v62 = vrot.slane %v1447_v59, 4  ;;  %v1461_v4 = vadd.f32 %v1460_v58, %v1459_v52  ;;  %v1475_v7 = vmax.f32 %v1473_v33, 0.0  ;;  %v1286_v44 = vadd.f32 %v1281_v50, %v2719_v42  ;;  %v1325_v11 = vpop.permute.xlu1 %1324 }
 0x158   : > { %v1388_v27 = vadd.f32 %v1387_v40, %v1386_v43  ;;  %v1402_v9 = vrot.slane %v1401_v29, 1  ;;  %v1419_v56 = vadd.f32 %v1418_v54, %v1417_v17  ;;  %v1432_v32 = vrot.slane %v1431_v1, 2  ;;  %v1323_v2 = vpop.permute.xlu0 %1322 }
 0x159   : > { %v1449_v36 = vadd.f32 %v1448_v62, %v1447_v59  ;;  %v1462_v48 = vrot.slane %v1461_v4, 4  ;;  %v1478_v15 = vsel %vm1379_vm3, %v1475_v7, 0.0  ;;  %v1490_v38 = vmul.f32 %v1475_v7, %v1475_v7 }
 0x15a   : > { %v1389_v47 = vadd.f32 %v1388_v27, %v1378_v60  ;;  %v1403_v20 = vadd.f32 %v1402_v9, %v1401_v29  ;;  %v1420_v30 = vrot.slane %v1419_v56, 1  ;;  %v1433_v53 = vadd.f32 %v1432_v32, %v1431_v1  ;;  %v1456_v29 = vld [vmem:[#allocation5 + $0xa] sm:$0x1] }
 0x15b   : > { %v1450_v6 = vrot.slane %v1449_v36, 2  ;;  %v1463_v5 = vadd.f32 %v1462_v48, %v1461_v4  ;;  %v1492_v42 = vsel %vm1379_vm3, %v1490_v38, 0.0  ;;  %v1472_v46 = vadd.f32 %v1471_v0, %v1286_v44 }
 0x15c   : > { %1391 = vst.msk [vmem:[#allocation5] sm:$0x1] %vm1390_vm4, %v1389_v47  ;;  %v1404_v22 = vadd.f32 %v1403_v20, %v1392_v28  ;;  %v1421_v25 = vadd.f32 %v1420_v30, %v1419_v56  ;;  %v1434_v61 = vrot.slane %v1433_v53, 1  ;;  %v1308_v45 = vadd.f32 %v1304_v35, %v2722_v51  ;;  %v1344_v28 = vpop.permute.xlu0 %1343 }
 0x15d   : > { %v1451_v41 = vadd.f32 %v1450_v6, %v1449_v36  ;;  %v1464_v37 = vrot.slane %v1463_v5, 2  ;;  %v1474_v14 = vmax.f32 %v1472_v46, 0.0  ;;  %v1307_v50 = vadd.f32 %v1302_v23, %v2725_v34  ;;  %v1444_v34 = vld [vmem:[#allocation5 + $0x2] sm:$0x1]  ;;  %v1346_v23 = vpop.permute.xlu1 %1345 }
 0x15e   : > { %1405 = vst.msk [vmem:[#allocation5 + $0x8] sm:$0x1] %vm1390_vm4, %v1404_v22  ;;  %v1422_v57 = vadd.f32 %v1421_v25, %v1412_v19  ;;  %v1435_v21 = vadd.f32 %v1434_v61, %v1433_v53  ;;  %v1505_v0 = vadd.f32 %v1503_v24, %v1308_v45  ;;  %v1329_v13 = vadd.f32 %v1325_v11, %v2728_v3 }
 0x15f   : > { %v1452_v43 = vrot.slane %v1451_v41, 1  ;;  %v1465_v26 = vadd.f32 %v1464_v37, %v1463_v5  ;;  %v1477_v51 = vsel %vm1379_vm3, %v1474_v14, 0.0  ;;  %v1489_v17 = vmul.f32 %v1474_v14, %v1474_v14 }
 0x160   : > { %1423 = vst.msk [vmem:[#allocation5 + $0x1] sm:$0x1] %vm1390_vm4, %v1422_v57  ;;  %v1436_v8 = vadd.f32 %v1435_v21, %v1424_v16  ;;  %v1479_v58 = vadd.f32 %v1478_v15, %v1477_v51  ;;  %v1507_v59 = vmax.f32 %v1505_v0, 0.0  ;;  %v1504_v52 = vadd.f32 %v1503_v24, %v1307_v50 }
 0x161   : > { %v1453_v33 = vadd.f32 %v1452_v43, %v1451_v41  ;;  %v1466_v35 = vrot.slane %v1465_v26, 1  ;;  %v1491_v40 = vsel %vm1379_vm3, %v1489_v17, 0.0  ;;  %v1537_v3 = vadd.f32 %v1535_v12, %v1329_v13 }
 0x162   : > { %1437 = vst.msk [vmem:[#allocation5 + $0x9] sm:$0x1] %vm1390_vm4, %v1436_v8  ;;  %v1480_v54 = vrot.slane %v1479_v58, 4  ;;  %v1493_v1 = vadd.f32 %v1492_v42, %v1491_v40  ;;  %v1510_v60 = vsel %vm1379_vm3, %v1507_v59, 0.0  ;;  %v1522_v62 = vmul.f32 %v1507_v59, %v1507_v59 }
 0x163   : > { %v1454_v4 = vadd.f32 %v1453_v33, %v1444_v34  ;;  %v1467_v7 = vadd.f32 %v1466_v35, %v1465_v26  ;;  %v1506_v44 = vmax.f32 %v1504_v52, 0.0  ;;  %v1539_v27 = vmax.f32 %v1537_v3, 0.0  ;;  %v1488_v26 = vld [vmem:[#allocation5 + $0xb] sm:$0x1]  ;;  %v1367_v33 = vpop.permute.xlu1 %1366 }
 0x164   : > { %v1481_v9 = vadd.f32 %v1480_v54, %v1479_v58  ;;  %v1494_v24 = vrot.slane %v1493_v1, 4  ;;  %v1524_v56 = vsel %vm1379_vm3, %v1522_v62, 0.0  ;;  %v1328_v32 = vadd.f32 %v1323_v2, %v2731_v49  ;;  %v1365_v54 = vpop.permute.xlu0 %1364 }
 0x165   : > { %1455 = vst.msk [vmem:[#allocation5 + $0x2] sm:$0x1] %vm1390_vm4, %v1454_v4  ;;  %v1468_v36 = vadd.f32 %v1467_v7, %v1456_v29  ;;  %v1509_v48 = vsel %vm1379_vm3, %v1506_v44, 0.0  ;;  %v1521_v15 = vmul.f32 %v1506_v44, %v1506_v44  ;;  %v1542_v38 = vsel %vm1379_vm3, %v1539_v27, 0.0  ;;  %v1508_v7 = vld [vmem:[#allocation5 + $0x4] sm:$0x1] }
 0x166   : > { %v1482_v47 = vrot.slane %v1481_v9, 2  ;;  %v1495_v20 = vadd.f32 %v1494_v24, %v1493_v1  ;;  %v1511_v30 = vadd.f32 %v1510_v60, %v1509_v48  ;;  %v1554_v53 = vmul.f32 %v1539_v27, %v1539_v27 }
 0x167   : > { %1469 = vst.msk [vmem:[#allocation5 + $0xa] sm:$0x1] %vm1390_vm4, %v1468_v36  ;;  %v1523_v49 = vsel %vm1379_vm3, %v1521_v15, 0.0  ;;  %v1536_v19 = vadd.f32 %v1535_v12, %v1328_v32  ;;  %v1350_v6 = vadd.f32 %v1346_v23, %v2733_v31  ;;  %v1349_v5 = vadd.f32 %v1344_v28, %v2735_v39  ;;  %v1476_v12 = vld [vmem:[#allocation5 + $0x3] sm:$0x1] }
 0x168   : > { %v1483_v42 = vadd.f32 %v1482_v47, %v1481_v9  ;;  %v1496_v46 = vrot.slane %v1495_v20, 2  ;;  %v1512_v11 = vrot.slane %v1511_v30, 4  ;;  %v1525_v22 = vadd.f32 %v1524_v56, %v1523_v49  ;;  %v1520_v36 = vld [vmem:[#allocation5 + $0xc] sm:$0x1] }
 0x169   : > { %v1556_v25 = vsel %vm1379_vm3, %v1554_v53, 0.0  ;;  %v1538_v61 = vmax.f32 %v1536_v19, 0.0  ;;  %v1569_v45 = vadd.f32 %v1567_v10, %v1350_v6  ;;  %v1568_v16 = vadd.f32 %v1567_v10, %v1349_v5 }
 0x16a   : > { %v1484_v41 = vrot.slane %v1483_v42, 1  ;;  %v1497_v37 = vadd.f32 %v1496_v46, %v1495_v20  ;;  %v1513_v14 = vadd.f32 %v1512_v11, %v1511_v30  ;;  %v1526_v50 = vrot.slane %v1525_v22, 4 }
 0x16b   : > { %v1541_v31 = vsel %vm1379_vm3, %v1538_v61, 0.0  ;;  %v1553_v57 = vmul.f32 %v1538_v61, %v1538_v61  ;;  %v1571_v39 = vmax.f32 %v1569_v45, 0.0  ;;  %v1570_v21 = vmax.f32 %v1568_v16, 0.0  ;;  %v1540_v61 = vld [vmem:[#allocation5 + $0x5] sm:$0x1] }
 0x16c   : > { %v1485_v0 = vadd.f32 %v1484_v41, %v1483_v42  ;;  %v1498_v13 = vrot.slane %v1497_v37, 1  ;;  %v1514_v2 = vrot.slane %v1513_v14, 2  ;;  %v1527_v43 = vadd.f32 %v1526_v50, %v1525_v22 }
 0x16d   : > { %v1543_v51 = vadd.f32 %v1542_v38, %v1541_v31  ;;  %v1555_v17 = vsel %vm1379_vm3, %v1553_v57, 0.0  ;;  %v1574_v10 = vsel %vm1379_vm3, %v1571_v39, 0.0  ;;  %v1586_v8 = vmul.f32 %v1571_v39, %v1571_v39 }
 0x16e   : > { %v1486_v34 = vadd.f32 %v1485_v0, %v1476_v12  ;;  %v1499_v58 = vadd.f32 %v1498_v13, %v1497_v37  ;;  %v1515_v59 = vadd.f32 %v1514_v2, %v1513_v14  ;;  %v1528_v52 = vrot.slane %v1527_v43, 2  ;;  %v1552_v12 = vld [vmem:[#allocation5 + $0xd] sm:$0x1]  ;;  %v1572_v2 = vld [vmem:[#allocation5 + $0x6] sm:$0x1] }
 0x16f   : > { %v1544_v35 = vrot.slane %v1543_v51, 4  ;;  %v1557_v40 = vadd.f32 %v1556_v25, %v1555_v17  ;;  %v1588_v3 = vsel %vm1379_vm3, %v1586_v8, 0.0  ;;  %v1573_v29 = vsel %vm1379_vm3, %v1570_v21, 0.0 }
 0x170   : > { %1487 = vst.msk [vmem:[#allocation5 + $0x3] sm:$0x1] %vm1390_vm4, %v1486_v34  ;;  %v1500_v1 = vadd.f32 %v1499_v58, %v1488_v26  ;;  %v1516_v60 = vrot.slane %v1515_v59, 1  ;;  %v1529_v62 = vadd.f32 %v1528_v52, %v1527_v43  ;;  %v1575_v4 = vadd.f32 %v1574_v10, %v1573_v29  ;;  %v1584_v52 = vld [vmem:[#allocation5 + $0xe] sm:$0x1] }
 0x171   : > { %v1545_v44 = vadd.f32 %v1544_v35, %v1543_v51  ;;  %v1558_v27 = vrot.slane %v1557_v40, 4  ;;  %v1585_v9 = vmul.f32 %v1570_v21, %v1570_v21  ;;  %v1371_v24 = vadd.f32 %v1367_v33, %v2738_v63 }
 0x172   : > { %1501 = vst.msk [vmem:[#allocation5 + $0xb] sm:$0x1] %vm1390_vm4, %v1500_v1  ;;  %v1517_v56 = vadd.f32 %v1516_v60, %v1515_v59  ;;  %v1530_v32 = vrot.slane %v1529_v62, 1  ;;  %v1576_v23 = vrot.slane %v1575_v4, 4  ;;  %v1370_v28 = vadd.f32 %v1365_v54, %v2742_v55 }
 0x173   : > { %v1546_v48 = vrot.slane %v1545_v44, 2  ;;  %v1559_v15 = vadd.f32 %v1558_v27, %v1557_v40  ;;  %v1587_v38 = vsel %vm1379_vm3, %v1585_v9, 0.0  ;;  %v1601_v47 = vadd.f32 %v1599_v18, %v1371_v24  ;;  %v1616_v9 = vld [vmem:[#allocation5 + $0xf] sm:$0x1] }
 0x174   : > { %v1518_v20 = vadd.f32 %v1517_v56, %v1508_v7  ;;  %v1531_v30 = vadd.f32 %v1530_v32, %v1529_v62  ;;  %v1577_v53 = vadd.f32 %v1576_v23, %v1575_v4  ;;  %v1589_v49 = vadd.f32 %v1588_v3, %v1587_v38  ;;  %v1604_v7 = vld [vmem:[#allocation5 + $0x7] sm:$0x1] }
 0x175   : > { %v1547_v63 = vadd.f32 %v1546_v48, %v1545_v44  ;;  %v1560_v19 = vrot.slane %v1559_v15, 2  ;;  %v1603_v6 = vmax.f32 %v1601_v47, 0.0  ;;  %v1600_v5 = vadd.f32 %v1599_v18, %v1370_v28 }
 0x176   : > { %1519 = vst.msk [vmem:[#allocation5 + $0x4] sm:$0x1] %vm1390_vm4, %v1518_v20  ;;  %v1532_v42 = vadd.f32 %v1531_v30, %v1520_v36  ;;  %v1578_v55 = vrot.slane %v1577_v53, 2  ;;  %v1590_v46 = vrot.slane %v1589_v49, 4 }
 0x177   : > { %v1548_v11 = vrot.slane %v1547_v63, 1  ;;  %v1561_v22 = vadd.f32 %v1560_v19, %v1559_v15  ;;  %v1618_v25 = vmul.f32 %v1603_v6, %v1603_v6  ;;  %v1606_v41 = vsel %vm1379_vm3, %v1603_v6, 0.0 }
 0x178   : > { %1533 = vst.msk [vmem:[#allocation5 + $0xc] sm:$0x1] %vm1390_vm4, %v1532_v42  ;;  %v1579_v45 = vadd.f32 %v1578_v55, %v1577_v53  ;;  %v1591_v16 = vadd.f32 %v1590_v46, %v1589_v49  ;;  %v1602_v37 = vmax.f32 %v1600_v5, 0.0 }
 0x179   : > { %v1549_v14 = vadd.f32 %v1548_v11, %v1547_v63  ;;  %v1562_v50 = vrot.slane %v1561_v22, 1  ;;  %v1620_v18 = vsel %vm1379_vm3, %v1618_v25, 0.0 }
 0x17a   : > { %v1580_v31 = vrot.slane %v1579_v45, 1  ;;  %v1592_v57 = vrot.slane %v1591_v16, 2  ;;  %v1605_v39 = vsel %vm1379_vm3, %v1602_v37, 0.0  ;;  %v1617_v21 = vmul.f32 %v1602_v37, %v1602_v37 }
 0x17b   : > { %v1550_v0 = vadd.f32 %v1549_v14, %v1540_v61  ;;  %v1563_v13 = vadd.f32 %v1562_v50, %v1561_v22  ;;  %v1607_v43 = vadd.f32 %v1606_v41, %v1605_v39 }
 0x17c   : > { %v1581_v26 = vadd.f32 %v1580_v31, %v1579_v45  ;;  %v1593_v51 = vadd.f32 %v1592_v57, %v1591_v16  ;;  %v1619_v17 = vsel %vm1379_vm3, %v1617_v21, 0.0 }
 0x17d   : > { %1551 = vst.msk [vmem:[#allocation5 + $0x5] sm:$0x1] %vm1390_vm4, %v1550_v0  ;;  %v1564_v10 = vadd.f32 %v1563_v13, %v1552_v12  ;;  %v1608_v8 = vrot.slane %v1607_v43, 4  ;;  %v1621_v34 = vadd.f32 %v1620_v18, %v1619_v17 }
 0x17e   : > { %v1582_v58 = vadd.f32 %v1581_v26, %v1572_v2  ;;  %v1594_v59 = vrot.slane %v1593_v51, 1 }
 0x17f   : > { %1565 = vst.msk [vmem:[#allocation5 + $0xd] sm:$0x1] %vm1390_vm4, %v1564_v10  ;;  %v1609_v33 = vadd.f32 %v1608_v8, %v1607_v43  ;;  %v1622_v35 = vrot.slane %v1621_v34, 4 }
 0x180   : > { %1583 = vst.msk [vmem:[#allocation5 + $0x6] sm:$0x1] %vm1390_vm4, %v1582_v58  ;;  %v1595_v40 = vadd.f32 %v1594_v59, %v1593_v51 }
 0x181   : > { %v1610_v3 = vrot.slane %v1609_v33, 2  ;;  %v1623_v29 = vadd.f32 %v1622_v35, %v1621_v34 }
 0x182   : > { %v1596_v54 = vadd.f32 %v1595_v40, %v1584_v52 }
 0x183   : > { %v1611_v1 = vadd.f32 %v1610_v3, %v1609_v33  ;;  %v1624_v60 = vrot.slane %v1623_v29, 2 }
 0x184   : > { %1597 = vst.msk [vmem:[#allocation5 + $0xe] sm:$0x1] %vm1390_vm4, %v1596_v54 }
 0x185   : > { %v1612_v62 = vrot.slane %v1611_v1, 1  ;;  %v1625_v4 = vadd.f32 %v1624_v60, %v1623_v29 }
 0x187   : > { %v1613_v44 = vadd.f32 %v1612_v62, %v1611_v1  ;;  %v1626_v27 = vrot.slane %v1625_v4, 1 }
 0x189   : > { %v1614_v24 = vadd.f32 %v1613_v44, %v1604_v7  ;;  %v1627_v56 = vadd.f32 %v1626_v27, %v1625_v4 }
 0x18b   : > { %1615 = vst.msk [vmem:[#allocation5 + $0x7] sm:$0x1] %vm1390_vm4, %v1614_v24  ;;  %v1628_v32 = vadd.f32 %v1627_v56, %v1616_v9 }
 0x18d   : > { %1629 = vst.msk [vmem:[#allocation5 + $0xf] sm:$0x1] %vm1390_vm4, %v1628_v32 }
 0x18e   : > { %1844 = shalt.err (!%p1841_p9)
}
 0x18f   : > { %s1845_s8 = scalar_lea.hbm %s2850_s2, 256 }
 0x190   : > { %p1846_p10 = scmp.ne.s32.totalorder %s2850_s2, %s1845_s8  ;;  %p1851_p13 = scmp.lt.u32.totalorder %s1845_s8, %s2850_s2 }
 0x192   : > { %p1847_p11 = pnand %p1846_p10, %p1796_p2 }
 0x194   : > { %p1848_p12 = pneg %p1847_p11 }
 0x196   : > { %p1853_p0 = pnand %p1851_p13, %p1848_p12 }
 0x198   : > { %1856 = shalt.err (!%p1853_p0)
}
 0x199   : > { %s1878_s21 = smov 128   ;;  %s1879_s7 = smov 8  }
 0x19a   : > { %1787 = dma.vmem_to_hbm [thread:$0]  (%p1796_p2), %s1637_s4, 256, %s2850_s2, [#allocation3], %s1878_s21, %s1878_s21, %s1879_s7  }
 0x19b   : > { %1866 = dma.done.wait (%p1796_p2), [#allocation3], 256  }
 0x19c   : > { %1868 = vsyncadd (%p1796_p2), [#allocation3], 4294967040 }
 0x19d PF: > { %s14_s9 = sadd.s32 1, %s1871_s9  }
 0x19e   : > { %p11_p1 = scmp.ge.s32.totalorder %s14_s9, 4  }
 0x1a0   :  { %13 = sbr.rel (!%p11_p1) target bundleno = 2 (0x2), region = 64 }
 0x1a7   :  { %1652 = vsyncpa [#allocation3], 1 }
 0x1a8   :  { %1654 = vsyncpa [#allocation3 + $0x1], 1 }
 0x1a9   :  { %1655 = vsyncpa [#allocation4], 1 }
 0x1aa   :  { %1657 = vsyncpa [#allocation4 + $0x1], 1 }

</bundles_post_ra>
